<compile_context>
chip_gen: v5e
topology: v5e:2x2
jax: 0.10.0
libtpu: 0.0.40
codegen_flags: <defaults>
</compile_context>

<pallas_src>
import jax
import jax.numpy as jnp
from jax.experimental import pallas as pl
from jax.experimental.pallas import tpu as pltpu


def _transpose_kernel(x_ref, o_ref):
    # x block: (1, 1, TD, TE, F)  ->  o block: (1, 1, TE, TD, F)
    o_ref[...] = jnp.swapaxes(x_ref[...], 2, 3)


def _sublane_quantum(dtype) -> int:
    # Sublane packing quantum per dtype width: f32 -> 8, bf16 -> 16, int8 -> 32.
    return {4: 8, 2: 16, 1: 32}.get(jnp.dtype(dtype).itemsize, 8)


def _choose_tile(dim: int, quantum: int, max_tile: int) -> int:
    """Largest multiple of `quantum` that divides `dim` and is <= max_tile.

    Falls back to the full dimension, which is always legal under the
    (8,128)-or-full-dim block-shape rule."""
    best = None
    t = quantum
    limit = min(dim, max(max_tile, quantum))
    while t <= limit:
        if dim % t == 0:
            best = t
        t += quantum
    return best if best is not None else dim


def transpose_axis(x, *, target_block_bytes: int = 1 << 20):
    """Equivalent of torch `x.permute(0, 1, 3, 2, 4)` for a 5-D array."""
    if x.ndim != 5:
        raise RuntimeError("Input x does not have 5 dim")
    B, C, D, E, F = x.shape
    itemsize = jnp.dtype(x.dtype).itemsize
    q = _sublane_quantum(x.dtype)

    # Pick TD/TE: sublane-aligned tiles of D and E targeting ~target_block_bytes
    # per block (F, the lane axis, stays whole).
    rows_budget = max(q, target_block_bytes // max(1, F * itemsize))
    TD = _choose_tile(D, q, min(D, rows_budget))
    TE = _choose_tile(E, q, max(q, rows_budget // TD))

    block_bytes = TD * TE * F * itemsize
    # 2x double-buffered input + 2x double-buffered output, plus slack.
    vmem_limit = int(min(max(6 * block_bytes, 16 << 20), 48 << 20))

    grid = (B, C, E // TE, D // TD)

    in_spec = pl.BlockSpec(
        (1, 1, TD, TE, F), lambda b, c, et, dt: (b, c, dt, et, 0)
    )
    out_spec = pl.BlockSpec(
        (1, 1, TE, TD, F), lambda b, c, et, dt: (b, c, et, dt, 0)
    )

    return pl.pallas_call(
        _transpose_kernel,
        out_shape=jax.ShapeDtypeStruct((B, C, E, D, F), x.dtype),
        grid_spec=pl.GridSpec(grid=grid, in_specs=[in_spec], out_specs=out_spec),
        compiler_params=pltpu.CompilerParams(
            dimension_semantics=("parallel", "parallel", "parallel", "parallel"),
            vmem_limit_bytes=vmem_limit,
        ),
        cost_estimate=pl.CostEstimate(
            flops=0,
            transcendentals=0,
            bytes_accessed=2 * x.size * itemsize,
        ),
    )(x)


if __name__ == "__main__":
    key = jax.random.PRNGKey(0)
    B, C, D, E, F = 2, 3, 16, 32, 256
    x = jax.random.normal(key, (B, C, D, E, F), dtype=jnp.float32)
    ref = jnp.transpose(x, (0, 1, 3, 2, 4))

    # Default (~1 MiB-target) blocks.
    out = jax.block_until_ready(transpose_axis(x))
    assert out.shape == (B, C, E, D, F), out.shape
    assert jnp.array_equal(out, ref), "mismatch vs reference (default blocks)"

    # Small block target to exercise the D/E tiling + index-map permutation path.
    out_tiled = jax.block_until_ready(transpose_axis(x, target_block_bytes=64 * 1024))
    assert jnp.array_equal(out_tiled, ref), "mismatch vs reference (tiled blocks)"

    print("KERNEL_OK")
</pallas_src>

<mosaic_0001>
module attributes {stable_mosaic.version = 11 : i64} {
  func.func @_transpose_kernel(%arg0: i32, %arg1: i32, %arg2: i32, %arg3: i32, %arg4: memref<1x1x16x32x256xf32, #tpu.memory_space<vmem>>, %arg5: memref<1x1x32x16x256xf32, #tpu.memory_space<vmem>>) attributes {dimension_semantics = [#tpu.dimension_semantics<parallel>, #tpu.dimension_semantics<parallel>, #tpu.dimension_semantics<parallel>, #tpu.dimension_semantics<parallel>], iteration_bounds = array<i64: 2, 3, 1, 1>, scalar_prefetch = 0 : i64, scratch_operands = 0 : i64, tpu.core_type = #tpu.core_type<tc>, window_params = [{transform_indices = @transform_0, window_bounds = array<i64: 1, 1, 16, 32, 256>}, {transform_indices = @transform_1, window_bounds = array<i64: 1, 1, 32, 16, 256>}]} {
    %c0 = arith.constant 0 : index
    %c0_0 = arith.constant 0 : index
    %c0_1 = arith.constant 0 : index
    %c0_2 = arith.constant 0 : index
    %c0_3 = arith.constant 0 : index
    %0 = vector.load %arg4[%c0, %c0_0, %c0_1, %c0_2, %c0_3] : memref<1x1x16x32x256xf32, #tpu.memory_space<vmem>>, vector<1x1x16x32x256xf32>
    %1 = tpu.transpose %0, [0, 1, 3, 2, 4] : vector<1x1x16x32x256xf32> -> vector<1x1x32x16x256xf32>
    %c0_4 = arith.constant 0 : index
    %c0_5 = arith.constant 0 : index
    %c0_6 = arith.constant 0 : index
    %c0_7 = arith.constant 0 : index
    %c0_8 = arith.constant 0 : index
    %2 = vector.load %arg5[%c0_4, %c0_5, %c0_6, %c0_7, %c0_8] : memref<1x1x32x16x256xf32, #tpu.memory_space<vmem>>, vector<1x1x32x16x256xf32>
    tpu.vector_store %arg5[%c0_4, %c0_5, %c0_6, %c0_7, %c0_8], %1 {strides = array<i32>} : memref<1x1x32x16x256xf32, #tpu.memory_space<vmem>>, vector<1x1x32x16x256xf32>,
    return
  }
  func.func @transform_0(%arg0: i32, %arg1: i32, %arg2: i32, %arg3: i32) -> (i32, i32, i32, i32, i32) {
    %c0_i32 = arith.constant 0 : i32
    %c0_i32_0 = arith.constant 0 : i32
    return %arg0, %arg1, %arg3, %arg2, %c0_i32 : i32, i32, i32, i32, i32
  }
  func.func @transform_1(%arg0: i32, %arg1: i32, %arg2: i32, %arg3: i32) -> (i32, i32, i32, i32, i32) {
    %c0_i32 = arith.constant 0 : i32
    %c0_i32_0 = arith.constant 0 : i32
    return %arg0, %arg1, %arg2, %arg3, %c0_i32 : i32, i32, i32, i32, i32
  }
}

</mosaic_0001>

<bundles_post_ra>
// kernel: tpu_custom_call.1
= control target key start
LH: loop header
LB: loop body
LE: loop exit
PB: predicated region body
PF: predicated region fallthrough
CT: control target
= control target key end

     0   :  { %6 = vsyncpa [#allocation3], 0  ;;  %s4761_s0 = inlined_call_operand.hbm [shape: f32[2,3,16,32,256], index: 0, kind: input, shape index: {}]   ;;  %s4762_s1 = inlined_call_operand.hbm [shape: f32[2,3,32,16,256], index: 1, kind: output, shape index: {}]  }
   0x1   :  { %8 = vsyncpa [#allocation3 + $0x1], 0 }
   0x2   :  { %9 = vsyncpa [#allocation4], 0 }
   0x3   :  { %11 = vsyncpa [#allocation4 + $0x1], 0  ;;  %s2611_s6 = smov 0   ;;  %s2613_s7 = smov 0  }
   0x4   :  { %s2615_s8 = smov 0   ;;  %s2617_s9 = smov 0  }
   0x5   :  { %s2619_s10 = smov 0   ;;  %s2621_s11 = smov 0  }
   0x6   :  { %s2623_s12 = smov 0   ;;  %s2625_s13 = smov 0  }
   0x7 LB: > { %s2364_s14 = sadd.s32 4294967295, %s2593_s13   ;;  %s2365_s15 = sadd.s32 4294967294, %s2593_s13   ;;  %s2593_s13 = sphi %s2625_s13, %s17_s13   ;;  %s2589_s12 = sphi %s2623_s12, %s4888_s12   ;;  %s2585_s11 = sphi %s2621_s11, %s4887_s11   ;;  %s2581_s10 = sphi %s2619_s10, %s4886_s10   ;;  %s2577_s9 = sphi %s2617_s9, %s4885_s9   ;;  %s2573_s8 = sphi %s2615_s8, %s4884_s8   ;;  %s2569_s7 = sphi %s2613_s7, %s4883_s7   ;;  %s2565_s6 = sphi %s2611_s6, %s4882_s6  }
   0x8   : > { %s39_s16 = sadd.s32 1, %s2585_s11  ;;  %s43_s17 = sadd.s32 1, %s2589_s12 }
   0x9   : > { %p41_p0 = scmp.ge.s32.totalorder %s39_s16, 3  ;;  %s56_s18 = sadd.s32 1, %s2573_s8 }
   0xa   : > { %p63_p1 = scmp.ne.s32.totalorder %s2573_s8, %s2569_s7  ;;  %p64_p2 = scmp.eq.s32.totalorder %s2593_s13, 0 }
   0xb   : > { %s4890_s16 = smov (%p41_p0, %s39_s16), 0  ;;  %s4892_s17 = smov (!%p41_p0, %s43_s17), %s2589_s12 }
   0xc   : > { %s48_s19 = ssub.s32 %s2585_s11, %s4890_s16  ;;  %p2664_p3 = por %p64_p2, %p63_p1 }
   0xd   : > { %p45_p4 = scmp.ge.s32.totalorder %s4892_s17, 2  ;;  %p69_p5 = scmp.ne.s32.totalorder %s2569_s7, %s2565_s6 }
   0xe   : > { %p70_p6 = scmp.eq.s32.totalorder %s2364_s14, 0  ;;  %p99_p7 = scmp.eq.s32.totalorder %s2364_s14, 5 }
   0xf   : > { %s4894_s17 = smov (%p45_p4, %s4892_s17), 0  ;;  %p105_p10 = scmp.eq.s32.totalorder %s2365_s15, 5 }
  0x10   : > { %4781 = sst [smem:[#allocation8_spill]] %s4894_s17  ;;  %p2672_p8 = por %p70_p6, %p69_p5 }
  0x11   : > { %p2676_p9 = por %p99_p7, %p63_p1  ;;  %s47_s23 = ssub.s32 %s2589_s12, %s4894_s17 }
  0x12   : > { %s49_s24 = sor.u32 %s48_s19, %s47_s23  ;;  %p2682_p12 = por %p105_p10, %p69_p5 }
  0x13   : > { %p54_p11 = scmp.eq.s32.totalorder %s49_s24, 0  ;;  %p2393_p13 = scmp.lt.s32.totalorder %s2593_s13, 6 }
  0x14   : > { %s125_s26 = sand.u32 1, %s2573_s8   ;;  %s2369_s29 = sshll.u32 %s2585_s11, 7 }
  0x15   : > { %s2689_s27 = scalar_select %p54_p11, %s2573_s8, %s56_s18  }
  0x16   : > { %s2368_s28 = sshll.u32 %s125_s26, 10  ;;  %s2379_s30 = smul.u32 384, %s2589_s12 }
  0x17   : > { %s129_s2 = scalar_lea.vmem [#allocation2], %s2368_s28  ;;  %p2386_p0 = pnand %p2393_p13, %p2664_p3 }
  0x18   : > { %s145_s3 = sshll.u32 %s129_s2, 4  ;;  %s140_s4 = sadd.s32 %s2379_s30, %s2369_s29  ;;  %s146_s3 = int_to_ptr.vmem [resolvable:$true] %s145_s3 }
  0x19   : > { %s2370_s5 = sshll.u32 %s140_s4, 3  ;;  %p2371_p1 = scmp.ge.s32.totalorder %s2593_s13, 1 }
  0x1a   : > { %s142_s19 = scalar_lea.hbm %s4761_s0, %s2370_s5  ;;  %p153_p2 = scmp.lt.s32.totalorder %s2593_s13, 7 }
  0x1b   : > { %s143_s23 = sshll.u32 %s142_s19, 4  ;;  %s126_s18 = scalar_lea.sflag [#allocation3], %s125_s26  ;;  %s144_s23 = int_to_ptr.hbm [resolvable:$true] %s143_s23 }
  0x1c   : > { %s2595_s24 = smov 256   ;;  %s2596_s17 = smov 16  }
  0x1d   : > { %2388 = dma.hbm_to_vmem [thread:$0]  (!%p2386_p0), %s144_s23, 16384, %s146_s3, %s126_s18, %s2595_s24, %s2595_s24, %s2596_s17  }
  0x1e   : > { %p154_p4 = pnand %p2371_p1, %p153_p2 }
  0x20   : > { %157 = sbr.rel (%p154_p4) target bundleno = 314 (0x13a), region = 24 }
  0x25   : > { %s2701_s20 = sand.u32 1, %s2569_s7  }
  0x26   : > { %s2372_s28 = sshll.u32 %s2701_s20, 10  ;;  %s160_s29 = scalar_lea.sflag [#allocation3], %s2701_s20 }
  0x27   : > { %s2707_s30 = scalar_lea.vmem [#allocation2], %s2372_s28 }
  0x28   : > { %2556 = dma.done.wait (%p2672_p8), %s160_s29, 16384  }
  0x29   : > { %2558 = vsyncadd (%p2672_p8), %s160_s29, 4294950912  ;;  %v2597_v0 = vmov 1983009808   ;;  %v2598_v2 = vmov 1934713408   ;;  %v2714_v4 = vld [vmem:[%s2707_s30] sm:$0xff] }
  0x2a   : > { %v321_v1 = vunpack.c.l.s4 %v2597_v0  ;;  %v369_v3 = vunpack.c.l.s4 %v2598_v2  ;;  %v2717_v5 = vld [vmem:[%s2707_s30 + $0x40] sm:$0xff]  ;;  %vm316_vm0 = vcmask 1047556   ;;  %v2748_v20 = vld [vmem:[%s2707_s30 + $0x8] sm:$0xff]  ;;  %s2906_s17 = scalar_lea.vmem [#allocation5], %s2372_s28  ;;  %s2380_s21 = smul.u32 384, %s2581_s10 }
  0x2b   : > { %v2720_v6 = vld [vmem:[%s2707_s30 + $0x80] sm:$0xff]  ;;  %v2755_v24 = vld [vmem:[%s2707_s30 + $0x48] sm:$0xff]  ;;  %s2375_s26 = sshll.u32 %s2577_s9, 7  ;;  %s2257_s5 = sshll.u32 %s2906_s17, 4  ;;  %s2258_s5 = int_to_ptr.vmem [resolvable:$true] %s2257_s5 }
  0x2c   : > { %v2722_v7 = vunpack.c.0.s8 %v321_v1  ;;  %v2725_v8 = vld [vmem:[%s2707_s30 + $0xc0] sm:$0xff]  ;;  %v315_v11 = vrot.slane %v2720_v6, 4  ;;  %v2745_v19 = vunpack.c.0.s8 %v369_v3  ;;  %v2758_v25 = vld [vmem:[%s2707_s30 + $0x88] sm:$0xff]  ;;  %s4671_s9 = sadd.s32 %s2380_s21, %s2375_s26  ;;  %s2237_s15 = scalar_lea.sflag [#allocation4], %s2701_s20 }
  0x2d   : > { %v2728_v9 = vld [vmem:[%s2707_s30 + $0x100] sm:$0xff]  ;;  %v328_v16 = vrot.slane %v2725_v8, 4  ;;  %v2761_v26 = vld [vmem:[%s2707_s30 + $0xc8] sm:$0xff]  ;;  %v1212_v31 = vrot.slane %v2758_v25, 4  ;;  %s2376_s10 = sshll.u32 %s4671_s9, 3  ;;  %s2515_s28 = scalar_lea.hbm %s4762_s1, 6144 }
  0x2e   : > { %v2731_v10 = vld [vmem:[%s2707_s30 + $0x140] sm:$0xff]  ;;  %v317_v21 = vsel %vm316_vm0, %v315_v11, %v2714_v4  ;;  %v2770_v30 = vld [vmem:[%s2707_s30 + $0x188] sm:$0xff]  ;;  %v1224_v32 = vrot.slane %v2761_v26, 4  ;;  %s2256_s4 = scalar_lea.hbm %s4762_s1, %s2376_s10 }
  0x2f   : > { %v2737_v14 = vld [vmem:[%s2707_s30 + $0x180] sm:$0xff]  ;;  %v2765_v28 = vperm.slane %v317_v21, %v2722_v7  ;;  %v329_v29 = vsel %vm316_vm0, %v328_v16, %v2717_v5  ;;  %v2782_v36 = vld [vmem:[%s2707_s30 + $0x108] sm:$0xff]  ;;  %v1213_v42 = vsel %vm316_vm0, %v1212_v31, %v2748_v20  ;;  %v1236_v48 = vrot.slane %v2770_v30, 4  ;;  %s2259_s14 = sshll.u32 %s2256_s4, 4  ;;  %s2260_s14 = int_to_ptr.hbm [resolvable:$true] %s2259_s14 }
  0x30   : > { %v2740_v15 = vld [vmem:[%s2707_s30 + $0x1c0] sm:$0xff]  ;;  %v340_v22 = vrot.slane %v2737_v14, 4  ;;  %v2775_v33 = vperm.slane %v329_v29, %v2722_v7  ;;  %v2785_v37 = vld [vmem:[%s2707_s30 + $0x148] sm:$0xff]  ;;  %v1225_v43 = vsel %vm316_vm0, %v1224_v32, %v2755_v24  ;;  %v2806_v46 = vperm.slane %v1213_v42, %v2722_v7  ;;  %s2509_s19 = sshra.s32 %s2260_s14, 4  ;;  %s2510_s19 = int_to_ptr.hbm [resolvable:$true] %s2509_s19 }
  0x31   : > { %v352_v23 = vrot.slane %v2740_v15, 4  ;;  %v2788_v38 = vld [vmem:[%s2707_s30 + $0x1c8] sm:$0xff]  ;;  %v2802_v44 = vld [vmem:[%s2707_s30 + $0x280] sm:$0xff]  ;;  %v2809_v47 = vperm.slane %v1225_v43, %v2722_v7  ;;  %v1237_v54 = vsel %vm316_vm0, %v1236_v48, %v2782_v36  ;;  %v366_v12 = vrot.slane %v2765_v28, 4  ;;  %s2511_s23 = scalar_lea.hbm %s2510_s19, 1024  ;;  %p2516_p7 = scmp.lt.s32.totalorder %s2510_s19, %s4762_s1 }
  0x32   : > { %v341_v34 = vsel %vm316_vm0, %v340_v22, %v2728_v9  ;;  %v364_v45 = vrot.slane %v2775_v33, 4  ;;  %v1248_v51 = vrot.slane %v2788_v38, 4  ;;  %v2822_v56 = vld [vmem:[%s2707_s30 + $0x200] sm:$0xff]  ;;  %v428_v58 = vrot.slane %v2802_v44, 4  ;;  %v2923_v29 = vld [vmem:[%s2707_s30 + $0x308] sm:$0xff]  ;;  %p2512_p3 = scmp.ne.s32.totalorder %s2510_s19, %s2511_s23  ;;  %p2517_p8 = scmp.lt.s32.totalorder %s2515_s28, %s2511_s23 }
  0x33   : > { %v353_v35 = vsel %vm316_vm0, %v352_v23, %v2731_v10  ;;  %v2792_v40 = vperm.slane %v341_v34, %v2722_v7  ;;  %v1260_v55 = vrot.slane %v2809_v47, 4  ;;  %v2825_v57 = vld [vmem:[%s2707_s30 + $0x2c0] sm:$0xff]  ;;  %v2834_v61 = vperm.slane %v1237_v54, %v2722_v7  ;;  %v2884_v54 = vld [vmem:[%s2707_s30 + $0x208] sm:$0xff]  ;;  %4786 = vst [vmem:[#allocation10_spill] sm:$0xff] %v2923_v29 }
  0x34   : > { %v2795_v41 = vperm.slane %v353_v35, %v2722_v7  ;;  %v365_v53 = vsel %vm316_vm0, %v364_v45, %v2765_v28  ;;  %v1249_v62 = vsel %vm316_vm0, %v1248_v51, %v2785_v37  ;;  %v2839_v63 = vld [vmem:[%s2707_s30 + $0x240] sm:$0xff]  ;;  %v429_v22 = vsel %vm316_vm0, %v428_v58, %v2822_v56  ;;  %v2876_v45 = vld [vmem:[%s2707_s30 + $0x288] sm:$0xff]  ;;  %p2513_p5 = pnand %p2512_p3, %p2676_p9  ;;  %p2518_p10 = por %p2517_p8, %p2516_p7 }
  0x35   : > { %v2829_v59 = vperm.slane %v365_v53, %v2745_v19  ;;  %v2842_v0 = vld [vmem:[%s2707_s30 + $0x380] sm:$0xff]  ;;  %v2848_v2 = vperm.slane %v1249_v62, %v2722_v7  ;;  %v1261_v3 = vsel %vm316_vm0, %v1260_v55, %v2806_v46  ;;  %v2868_v31 = vperm.slane %v429_v22, %v2722_v7  ;;  %v2887_v55 = vld [vmem:[%s2707_s30 + $0x2c8] sm:$0xff] }
  0x36   : > { %v388_v49 = vrot.slane %v2795_v41, 4  ;;  %v2853_v11 = vld [vmem:[%s2707_s30 + $0x300] sm:$0xff]  ;;  %v2864_v23 = vperm.slane %v1261_v3, %v2745_v19  ;;  %v440_v32 = vrot.slane %v2825_v57, 4  ;;  %v452_v43 = vrot.slane %v2842_v0, 4  ;;  %v2899_v22 = vld [vmem:[%s2707_s30 + $0x248] sm:$0xff]  ;;  %p2514_p6 = pneg %p2513_p5 }
  0x37   : > { %v2856_v16 = vld [vmem:[%s2707_s30 + $0x340] sm:$0xff]  ;;  %v1284_v35 = vrot.slane %v2848_v2, 4  ;;  %v2936_v39 = vld [vmem:[%s2707_s30 + $0x348] sm:$0xff] }
  0x38   : > { %v389_v60 = vsel %vm316_vm0, %v388_v49, %v2792_v40  ;;  %v2859_v21 = vld [vmem:[%s2707_s30 + $0x3c0] sm:$0xff]  ;;  %v441_v48 = vsel %vm316_vm0, %v440_v32, %v2839_v63  ;;  %v453_v3 = vsel %vm316_vm0, %v452_v43, %v2853_v11  ;;  %v2902_v32 = vld [vmem:[%s2707_s30 + $0x388] sm:$0xff]  ;;  %v1324_v43 = vrot.slane %v2876_v45, 4  ;;  %4788 = vst [vmem:[#allocation12_spill] sm:$0xff] %v2936_v39  ;;  %p2519_p11 = pnand %p2518_p10, %p2514_p6 }
  0x39   : > { %v2845_v1 = vperm.slane %v389_v60, %v2745_v19  ;;  %v464_v51 = vrot.slane %v2859_v21, 4  ;;  %v1285_v60 = vsel %vm316_vm0, %v1284_v35, %v2834_v61  ;;  %v2894_v62 = vperm.slane %v441_v48, %v2722_v7  ;;  %4785 = vst [vmem:[#allocation9_spill] sm:$0xff] %v2902_v32 }
  0x3a   : > { %v2911_v35 = vperm.slane %v453_v3, %v2722_v7  ;;  %v2926_v3 = vld [vmem:[%s2707_s30 + $0x3c8] sm:$0xff] }
  0x3b   : > { %v412_v34 = vrot.slane %v2845_v1, 4  ;;  %v465_v48 = vsel %vm316_vm0, %v464_v51, %v2856_v16  ;;  %v476_v49 = vrot.slane %v2894_v62, 4  ;;  %4787 = vst [vmem:[#allocation11_spill] sm:$0xff] %v2926_v3  ;;  %v1325_v51 = vsel %vm316_vm0, %v1324_v43, %v2884_v54 }
  0x3c   : > { %v2917_v53 = vperm.slane %v465_v48, %v2722_v7  ;;  %v1348_v48 = vrot.slane %v2902_v32, 4  ;;  %v1331_v27 = vperm.slane %v1325_v51, %v2722_v7 }
  0x3d   : > { %v413_v58 = vsel %vm316_vm0, %v412_v34, %v2829_v59  ;;  %v1291_v34 = vperm.slane %v1285_v60, %v2745_v19  ;;  %v477_v50 = vsel %vm316_vm0, %v476_v49, %v2868_v31 }
  0x3e   : > { %2108 = vst [vmem:[%s2906_s17] sm:$0xff] %v413_v58  ;;  %v1336_v58 = vrot.slane %v2887_v55, 4  ;;  %v500_v42 = vrot.slane %v2917_v53, 4  ;;  %v483_v43 = vperm.slane %v477_v50, %v2745_v19  ;;  %v1349_v13 = vsel %vm316_vm0, %v1348_v48, %v2923_v29 }
  0x3f   : > { %v1308_v60 = vrot.slane %v1291_v34, 4  ;;  %v1355_v51 = vperm.slane %v1349_v13, %v2722_v7 }
  0x40   : > { %v1337_v18 = vsel %vm316_vm0, %v1336_v58, %v2899_v22  ;;  %v501_v49 = vsel %vm316_vm0, %v500_v42, %v2911_v35  ;;  %v1360_v58 = vrot.slane %v2926_v3, 4  ;;  %v1310_v42 = vrot.slane %v2864_v23, 4 }
  0x41   : > { %v1309_v17 = vsel %vm316_vm0, %v1308_v60, %v2864_v23  ;;  %v1343_v52 = vperm.slane %v1337_v18, %v2722_v7  ;;  %v507_v60 = vperm.slane %v501_v49, %v2745_v19  ;;  %v414_v18 = vrot.slane %v2829_v59, 4 }
  0x42   : > { %2109 = vst [vmem:[%s2906_s17 + $0x8] sm:$0xff] %v1309_v17  ;;  %v1361_v17 = vsel %vm316_vm0, %v1360_v58, %v2936_v39  ;;  %v526_v48 = vrot.slane %v483_v43, 4  ;;  %v1311_v58 = vsel %vm316_vm0, %v1291_v34, %v1310_v42  ;;  %v367_v39 = vsel %vm316_vm0, %v2775_v33, %v366_v12 }
  0x43   : > { %v1372_v32 = vrot.slane %v1343_v52, 4  ;;  %v524_v13 = vrot.slane %v507_v60, 4  ;;  %v1367_v3 = vperm.slane %v1361_v17, %v2722_v7  ;;  %v415_v50 = vsel %vm316_vm0, %v2845_v1, %v414_v18  ;;  %2113 = vst [vmem:[%s2906_s17 + $0x28] sm:$0xff] %v1311_v58 }
  0x44   : > { %2112 = vst [vmem:[%s2906_s17 + $0x20] sm:$0xff] %v415_v50  ;;  %v527_v23 = vsel %vm316_vm0, %v507_v60, %v526_v48  ;;  %v390_v17 = vrot.slane %v2792_v40, 4  ;;  %v1262_v18 = vrot.slane %v2806_v46, 4  ;;  %v1286_v50 = vrot.slane %v2834_v61, 4 }
  0x45   : > { %v1373_v49 = vsel %vm316_vm0, %v1372_v32, %v1331_v27  ;;  %v525_v28 = vsel %vm316_vm0, %v524_v13, %v483_v43  ;;  %v1396_v29 = vrot.slane %v1367_v3, 4  ;;  %v375_v32 = vperm.slane %v367_v39, %v2745_v19  ;;  %2114 = vst [vmem:[%s2906_s17 + $0x30] sm:$0xff] %v527_v23 }
  0x46   : > { %v1379_v59 = vperm.slane %v1373_v49, %v2745_v19  ;;  %2110 = vst [vmem:[%s2906_s17 + $0x10] sm:$0xff] %v525_v28  ;;  %v478_v34 = vrot.slane %v2868_v31, 4  ;;  %v391_v12 = vsel %vm316_vm0, %v2795_v41, %v390_v17  ;;  %v502_v33 = vrot.slane %v2911_v35, 4 }
  0x47   : > { %v1397_v60 = vsel %vm316_vm0, %v1396_v29, %v1355_v51  ;;  %v1374_v39 = vrot.slane %v1331_v27, 4  ;;  %v399_v43 = vperm.slane %v391_v12, %v2745_v19  ;;  %v1263_v46 = vsel %vm316_vm0, %v2809_v47, %v1262_v18 }
  0x48   : > { %v1422_v1 = vrot.slane %v1379_v59, 4  ;;  %v1403_v40 = vperm.slane %v1397_v60, %v2745_v19  ;;  %v1287_v61 = vsel %vm316_vm0, %v2848_v2, %v1286_v50  ;;  %v1271_v29 = vperm.slane %v1263_v46, %v2745_v19 }
  0x49   : > { %v1295_v31 = vperm.slane %v1287_v61, %v2745_v19  ;;  %v479_v41 = vsel %vm316_vm0, %v2894_v62, %v478_v34  ;;  %v503_v27 = vsel %vm316_vm0, %v2917_v53, %v502_v33  ;;  %v416_v48 = vrot.slane %v399_v43, 4 }
  0x4a   : > { %v1420_v35 = vrot.slane %v1403_v40, 4  ;;  %v1423_v42 = vsel %vm316_vm0, %v1403_v40, %v1422_v1  ;;  %v487_v47 = vperm.slane %v479_v41, %v2745_v19  ;;  %v511_v13 = vperm.slane %v503_v27, %v2745_v19 }
  0x4b   : > { %2115 = vst [vmem:[%s2906_s17 + $0x38] sm:$0xff] %v1423_v42  ;;  %v1312_v2 = vrot.slane %v1295_v31, 4  ;;  %v1375_v49 = vsel %vm316_vm0, %v1343_v52, %v1374_v39  ;;  %v1398_v58 = vrot.slane %v1355_v51, 4  ;;  %v417_v23 = vsel %vm316_vm0, %v416_v48, %v375_v32 }
  0x4c   : > { %v1421_v62 = vsel %vm316_vm0, %v1420_v35, %v1379_v59  ;;  %v1383_v53 = vperm.slane %v1375_v49, %v2745_v19  ;;  %v418_v28 = vrot.slane %v375_v32, 4  ;;  %v528_v1 = vrot.slane %v511_v13, 4  ;;  %2116 = vst [vmem:[%s2906_s17 + $0x40] sm:$0xff] %v417_v23 }
  0x4d   : > { %2111 = vst [vmem:[%s2906_s17 + $0x18] sm:$0xff] %v1421_v62  ;;  %v1313_v17 = vsel %vm316_vm0, %v1312_v2, %v1271_v29  ;;  %v1399_v18 = vsel %vm316_vm0, %v1367_v3, %v1398_v58  ;;  %v1314_v50 = vrot.slane %v1271_v29, 4  ;;  %v530_v59 = vrot.slane %v487_v47, 4 }
  0x4e   : > { %v1407_v52 = vperm.slane %v1399_v18, %v2745_v19  ;;  %v419_v51 = vsel %vm316_vm0, %v399_v43, %v418_v28  ;;  %v1426_v34 = vrot.slane %v1383_v53, 4  ;;  %2117 = vst [vmem:[%s2906_s17 + $0x48] sm:$0xff] %v1313_v17  ;;  %v529_v32 = vsel %vm316_vm0, %v528_v1, %v487_v47 }
  0x4f   : > { %v1315_v60 = vsel %vm316_vm0, %v1295_v31, %v1314_v50  ;;  %v4789_v12 = vrot.slane %v2714_v4, 4  ;;  %v4790_v33 = vrot.slane %v2717_v5, 4  ;;  %2118 = vst [vmem:[%s2906_s17 + $0x50] sm:$0xff] %v529_v32  ;;  %v531_v43 = vsel %vm316_vm0, %v511_v13, %v530_v59 }
  0x50   : > { %v1424_v40 = vrot.slane %v1407_v52, 4  ;;  %v1427_v46 = vsel %vm316_vm0, %v1407_v52, %v1426_v34  ;;  %2120 = vst [vmem:[%s2906_s17 + $0x60] sm:$0xff] %v419_v51  ;;  %v4791_v5 = vrot.slane %v2728_v9, 4  ;;  %v4793_v31 = vrot.slane %v2748_v20, 4 }
  0x51   : > { %v319_v3 = vsel %vm316_vm0, %v2720_v6, %v4789_v12  ;;  %v331_v39 = vsel %vm316_vm0, %v2725_v8, %v4790_v33  ;;  %v4792_v8 = vrot.slane %v2731_v10, 4  ;;  %2121 = vst [vmem:[%s2906_s17 + $0x68] sm:$0xff] %v1315_v60  ;;  %v4796_v48 = vrot.slane %v2785_v37, 4 }
  0x52   : > { %v3024_v61 = vperm.slane %v319_v3, %v2722_v7  ;;  %v3028_v4 = vperm.slane %v331_v39, %v2722_v7  ;;  %v343_v6 = vsel %vm316_vm0, %v2737_v14, %v4791_v5  ;;  %v1215_v41 = vsel %vm316_vm0, %v2758_v25, %v4793_v31  ;;  %2122 = vst [vmem:[%s2906_s17 + $0x70] sm:$0xff] %v531_v43  ;;  %v4805_v3 = vld [vmem:[#allocation9_spill] sm:$0xff] }
  0x53   : > { %v355_v29 = vsel %vm316_vm0, %v2740_v15, %v4792_v8  ;;  %v1425_v27 = vsel %vm316_vm0, %v1424_v40, %v1383_v53  ;;  %v3045_v35 = vperm.slane %v343_v6, %v2722_v7  ;;  %v3051_v10 = vperm.slane %v1215_v41, %v2722_v7  ;;  %2123 = vst [vmem:[%s2906_s17 + $0x78] sm:$0xff] %v1427_v46  ;;  %v4808_v8 = vld [vmem:[#allocation11_spill] sm:$0xff] }
  0x54   : > { %v3048_v9 = vperm.slane %v355_v29, %v2722_v7  ;;  %2119 = vst [vmem:[%s2906_s17 + $0x58] sm:$0xff] %v1425_v27  ;;  %v376_v14 = vrot.slane %v3028_v4, 4  ;;  %v4794_v15 = vrot.slane %v2755_v24, 4  ;;  %v4795_v25 = vrot.slane %v2782_v36, 4 }
  0x55   : > { %v1251_v47 = vsel %vm316_vm0, %v2788_v38, %v4796_v48  ;;  %v4797_v36 = vrot.slane %v2822_v56, 4  ;;  %v4798_v38 = vrot.slane %v2839_v63, 4  ;;  %v4799_v58 = vrot.slane %v2853_v11, 4 }
  0x56   : > { %v1227_v20 = vsel %vm316_vm0, %v2761_v26, %v4794_v15  ;;  %v1239_v42 = vsel %vm316_vm0, %v2770_v30, %v4795_v25  ;;  %v400_v2 = vrot.slane %v3048_v9, 4  ;;  %v3076_v26 = vperm.slane %v1251_v47, %v2722_v7 }
  0x57   : > { %v3070_v13 = vperm.slane %v1227_v20, %v2722_v7  ;;  %v3073_v24 = vperm.slane %v1239_v42, %v2722_v7  ;;  %v377_v30 = vsel %vm316_vm0, %v376_v14, %v3024_v61  ;;  %v431_v37 = vsel %vm316_vm0, %v2802_v44, %v4797_v36 }
  0x58   : > { %v443_v49 = vsel %vm316_vm0, %v2825_v57, %v4798_v38  ;;  %v455_v62 = vsel %vm316_vm0, %v2842_v0, %v4799_v58  ;;  %v383_v23 = vperm.slane %v377_v30, %v2745_v19  ;;  %v401_v53 = vsel %vm316_vm0, %v400_v2, %v3045_v35 }
  0x59   : > { %v1272_v56 = vrot.slane %v3070_v13, 4  ;;  %v1296_v28 = vrot.slane %v3076_v26, 4  ;;  %v407_v44 = vperm.slane %v401_v53, %v2745_v19  ;;  %v3100_v63 = vperm.slane %v431_v37, %v2722_v7 }
  0x5a   : > { %v3103_v57 = vperm.slane %v443_v49, %v2722_v7  ;;  %v3106_v11 = vperm.slane %v455_v62, %v2722_v7  ;;  %v4800_v1 = vrot.slane %v2856_v16, 4  ;;  %v4801_v50 = vrot.slane %v2884_v54, 4  ;;  %v4803_v54 = vld [vmem:[#allocation10_spill] sm:$0xff] }
  0x5b   : > { %v1273_v0 = vsel %vm316_vm0, %v1272_v56, %v3051_v10  ;;  %v1297_v17 = vsel %vm316_vm0, %v1296_v28, %v3073_v24  ;;  %v420_v51 = vrot.slane %v407_v44, 4  ;;  %v4802_v16 = vrot.slane %v2899_v22, 4 }
  0x5c   : > { %v467_v18 = vsel %vm316_vm0, %v2859_v21, %v4800_v1  ;;  %v1327_v52 = vsel %vm316_vm0, %v2876_v45, %v4801_v50  ;;  %v1279_v59 = vperm.slane %v1273_v0, %v2745_v19  ;;  %v1303_v34 = vperm.slane %v1297_v17, %v2745_v19 }
  0x5d   : > { %v475_v32 = vperm.slane %v467_v18, %v2722_v7  ;;  %v488_v60 = vrot.slane %v3103_v57, 4  ;;  %v3125_v12 = vperm.slane %v1327_v52, %v2722_v7  ;;  %v1339_v21 = vsel %vm316_vm0, %v2887_v55, %v4802_v16  ;;  %v4806_v55 = vld [vmem:[#allocation12_spill] sm:$0xff] }
  0x5e   : > { %v4804_v45 = vrot.slane %v4803_v54, 4  ;;  %v421_v39 = vsel %vm316_vm0, %v420_v51, %v383_v23  ;;  %v1316_v40 = vrot.slane %v1303_v34, 4  ;;  %v1347_v46 = vperm.slane %v1339_v21, %v2722_v7 }
  0x5f   : > { %v512_v43 = vrot.slane %v475_v32, 4  ;;  %2124 = vst [vmem:[%s2906_s17 + $0x80] sm:$0xff] %v421_v39  ;;  %v489_v22 = vsel %vm316_vm0, %v488_v60, %v3100_v63  ;;  %v4807_v6 = vrot.slane %v4806_v55, 4  ;;  %v422_v31 = vrot.slane %v383_v23, 4  ;;  %v3197_v60 = vld [vmem:[%s2707_s30 + $0x90] sm:$0xff] }
  0x60   : > { %v1351_v33 = vsel %vm316_vm0, %v4805_v3, %v4804_v45  ;;  %v1317_v41 = vsel %vm316_vm0, %v1316_v40, %v1279_v59  ;;  %v495_v27 = vperm.slane %v489_v22, %v2745_v19  ;;  %v1384_v25 = vrot.slane %v1347_v46, 4  ;;  %v3208_v3 = vld [vmem:[%s2707_s30 + $0x10] sm:$0xff] }
  0x61   : > { %v3141_v5 = vperm.slane %v1351_v33, %v2722_v7  ;;  %v1363_v29 = vsel %vm316_vm0, %v4808_v8, %v4807_v6  ;;  %v513_v14 = vsel %vm316_vm0, %v512_v43, %v3106_v11  ;;  %2125 = vst [vmem:[%s2906_s17 + $0x88] sm:$0xff] %v1317_v41  ;;  %v423_v42 = vsel %vm316_vm0, %v407_v44, %v422_v31  ;;  %v3211_v43 = vld [vmem:[%s2707_s30 + $0x50] sm:$0xff] }
  0x62   : > { %v3152_v15 = vperm.slane %v1363_v29, %v2722_v7  ;;  %v519_v20 = vperm.slane %v513_v14, %v2745_v19  ;;  %v1318_v48 = vrot.slane %v1279_v59, 4  ;;  %2128 = vst [vmem:[%s2906_s17 + $0xa0] sm:$0xff] %v423_v42  ;;  %v534_v2 = vrot.slane %v495_v27, 4  ;;  %v3222_v29 = vld [vmem:[%s2707_s30 + $0x190] sm:$0xff] }
  0x63   : > { %v378_v30 = vrot.slane %v3024_v61, 4  ;;  %v402_v36 = vrot.slane %v3045_v35, 4  ;;  %v1385_v38 = vsel %vm316_vm0, %v1384_v25, %v3125_v12  ;;  %v1274_v58 = vrot.slane %v3051_v10, 4  ;;  %v3236_v25 = vld [vmem:[%s2707_s30 + $0x1d0] sm:$0xff] }
  0x64   : > { %v1408_v47 = vrot.slane %v3152_v15, 4  ;;  %v532_v37 = vrot.slane %v519_v20, 4  ;;  %v1319_v49 = vsel %vm316_vm0, %v1303_v34, %v1318_v48  ;;  %v1391_v62 = vperm.slane %v1385_v38, %v2745_v19 }
  0x65   : > { %2129 = vst [vmem:[%s2906_s17 + $0xa8] sm:$0xff] %v1319_v49  ;;  %v535_v53 = vsel %vm316_vm0, %v519_v20, %v534_v2  ;;  %v379_v61 = vsel %vm316_vm0, %v3028_v4, %v378_v30  ;;  %v403_v10 = vsel %vm316_vm0, %v3048_v9, %v402_v36  ;;  %v1275_v17 = vsel %vm316_vm0, %v3070_v13, %v1274_v58  ;;  %v3230_v20 = vld [vmem:[%s2707_s30 + $0x110] sm:$0xff]  ;;  %v3245_v30 = vld [vmem:[%s2707_s30 + $0x98] sm:$0xff] }
  0x66   : > { %v1409_v23 = vsel %vm316_vm0, %v1408_v47, %v3141_v5  ;;  %v533_v35 = vsel %vm316_vm0, %v532_v37, %v495_v27  ;;  %2130 = vst [vmem:[%s2906_s17 + $0xb0] sm:$0xff] %v535_v53  ;;  %v387_v28 = vperm.slane %v379_v61, %v2745_v19  ;;  %v1430_v44 = vrot.slane %v1391_v62, 4  ;;  %v3254_v58 = vld [vmem:[%s2707_s30 + $0x18] sm:$0xff] }
  0x67   : > { %v1415_v56 = vperm.slane %v1409_v23, %v2745_v19  ;;  %2126 = vst [vmem:[%s2906_s17 + $0x90] sm:$0xff] %v533_v35  ;;  %v411_v0 = vperm.slane %v403_v10, %v2745_v19  ;;  %v1298_v4 = vrot.slane %v3073_v24, 4  ;;  %v1283_v18 = vperm.slane %v1275_v17, %v2745_v19  ;;  %v3279_v17 = vld [vmem:[%s2707_s30 + $0x198] sm:$0xff] }
  0x68   : > { %v490_v50 = vrot.slane %v3100_v63, 4  ;;  %v514_v52 = vrot.slane %v3106_v11, 4  ;;  %v1386_v34 = vrot.slane %v3125_v12, 4  ;;  %v426_v45 = vrot.slane %v387_v28, 4 }
  0x69   : > { %v1428_v1 = vrot.slane %v1415_v56, 4  ;;  %v1431_v9 = vsel %vm316_vm0, %v1415_v56, %v1430_v44  ;;  %v424_v51 = vrot.slane %v411_v0, 4  ;;  %v1299_v59 = vsel %vm316_vm0, %v3076_v26, %v1298_v4  ;;  %v3266_v56 = vld [vmem:[%s2707_s30 + $0x58] sm:$0xff] }
  0x6a   : > { %2131 = vst [vmem:[%s2906_s17 + $0xb8] sm:$0xff] %v1431_v9  ;;  %v1307_v24 = vperm.slane %v1299_v59, %v2745_v19  ;;  %v491_v63 = vsel %vm316_vm0, %v3103_v57, %v490_v50  ;;  %v515_v11 = vsel %vm316_vm0, %v475_v32, %v514_v52  ;;  %v1387_v21 = vsel %vm316_vm0, %v1347_v46, %v1386_v34  ;;  %v3214_v46 = vld [vmem:[%s2707_s30 + $0xd0] sm:$0xff]  ;;  %v3289_v50 = vld [vmem:[%s2707_s30 + $0x1d8] sm:$0xff] }
  0x6b   : > { %v1429_v13 = vsel %vm316_vm0, %v1428_v1, %v1391_v62  ;;  %v425_v26 = vsel %vm316_vm0, %v424_v51, %v387_v28  ;;  %v499_v12 = vperm.slane %v491_v63, %v2745_v19  ;;  %v523_v16 = vperm.slane %v515_v11, %v2745_v19  ;;  %v3257_v62 = vld [vmem:[%s2707_s30 + $0xd8] sm:$0xff]  ;;  %v3305_v63 = vld [vmem:[%s2707_s30 + $0x290] sm:$0xff] }
  0x6c   : > { %2127 = vst [vmem:[%s2906_s17 + $0x98] sm:$0xff] %v1429_v13  ;;  %v1320_v54 = vrot.slane %v1307_v24, 4  ;;  %v1395_v57 = vperm.slane %v1387_v21, %v2745_v19  ;;  %v1410_v32 = vrot.slane %v3141_v5, 4  ;;  %v1322_v39 = vrot.slane %v1283_v18, 4  ;;  %v3299_v34 = vld [vmem:[%s2707_s30 + $0x158] sm:$0xff] }
  0x6d   : > { %2132 = vst [vmem:[%s2906_s17 + $0xc0] sm:$0xff] %v425_v26  ;;  %v536_v33 = vrot.slane %v523_v16, 4  ;;  %v538_v40 = vrot.slane %v499_v12, 4  ;;  %v540_v22 = vrot.slane %v3197_v60, 4  ;;  %v427_v6 = vsel %vm316_vm0, %v411_v0, %v426_v45  ;;  %v3276_v0 = vld [vmem:[%s2707_s30 + $0x118] sm:$0xff]  ;;  %v3322_v45 = vld [vmem:[%s2707_s30 + $0x210] sm:$0xff] }
  0x6e   : > { %v1321_v55 = vsel %vm316_vm0, %v1320_v54, %v1283_v18  ;;  %v1411_v5 = vsel %vm316_vm0, %v3152_v15, %v1410_v32  ;;  %v1434_v8 = vrot.slane %v1395_v57, 4  ;;  %v1323_v27 = vsel %vm316_vm0, %v1307_v24, %v1322_v39  ;;  %v3233_v15 = vld [vmem:[%s2707_s30 + $0x150] sm:$0xff]  ;;  %2136 = vst [vmem:[%s2906_s17 + $0xe0] sm:$0xff] %v427_v6  ;;  %v3434_v24 = vld [vmem:[%s2707_s30 + $0x358] sm:$0xff] }
  0x6f   : > { %2133 = vst [vmem:[%s2906_s17 + $0xc8] sm:$0xff] %v1321_v55  ;;  %v537_v31 = vsel %vm316_vm0, %v536_v33, %v499_v12  ;;  %v1419_v41 = vperm.slane %v1411_v5, %v2745_v19  ;;  %v539_v14 = vsel %vm316_vm0, %v523_v16, %v538_v40  ;;  %v541_v42 = vsel %vm316_vm0, %v540_v22, %v3208_v3  ;;  %v3331_v22 = vld [vmem:[%s2707_s30 + $0x250] sm:$0xff] }
  0x70   : > { %2134 = vst [vmem:[%s2906_s17 + $0xd0] sm:$0xff] %v537_v31  ;;  %v552_v47 = vrot.slane %v3214_v46, 4  ;;  %v3250_v38 = vperm.slane %v541_v42, %v2722_v7  ;;  %v564_v49 = vrot.slane %v3222_v29, 4  ;;  %v576_v61 = vrot.slane %v3236_v25, 4  ;;  %v3334_v55 = vld [vmem:[%s2707_s30 + $0x2d0] sm:$0xff] }
  0x71   : > { %v1432_v36 = vrot.slane %v1419_v41, 4  ;;  %v1435_v37 = vsel %vm316_vm0, %v1419_v41, %v1434_v8  ;;  %2137 = vst [vmem:[%s2906_s17 + $0xe8] sm:$0xff] %v1323_v27  ;;  %v1436_v4 = vrot.slane %v3245_v30, 4  ;;  %v1448_v9 = vrot.slane %v3257_v62, 4  ;;  %v3346_v27 = vld [vmem:[%s2707_s30 + $0x390] sm:$0xff] }
  0x72   : > { %v553_v23 = vsel %vm316_vm0, %v552_v47, %v3211_v43  ;;  %2138 = vst [vmem:[%s2906_s17 + $0xf0] sm:$0xff] %v539_v14  ;;  %v565_v44 = vsel %vm316_vm0, %v564_v49, %v3230_v20  ;;  %v577_v18 = vsel %vm316_vm0, %v576_v61, %v3233_v15  ;;  %v1460_v12 = vrot.slane %v3279_v17, 4  ;;  %v3355_v47 = vld [vmem:[%s2707_s30 + $0x310] sm:$0xff] }
  0x73   : > { %v1433_v28 = vsel %vm316_vm0, %v1432_v36, %v1395_v57  ;;  %v3271_v10 = vperm.slane %v553_v23, %v2722_v7  ;;  %v3284_v1 = vperm.slane %v565_v44, %v2722_v7  ;;  %2139 = vst [vmem:[%s2906_s17 + $0xf8] sm:$0xff] %v1435_v37  ;;  %v3295_v51 = vperm.slane %v577_v18, %v2722_v7  ;;  %v3358_v36 = vld [vmem:[%s2707_s30 + $0x350] sm:$0xff]  ;;  %v3421_v23 = vld [vmem:[%s2707_s30 + $0x318] sm:$0xff] }
  0x74   : > { %2135 = vst [vmem:[%s2906_s17 + $0xd8] sm:$0xff] %v1433_v28  ;;  %v1437_v13 = vsel %vm316_vm0, %v1436_v4, %v3254_v58  ;;  %v1449_v26 = vsel %vm316_vm0, %v1448_v9, %v3266_v56  ;;  %v1472_v32 = vrot.slane %v3289_v50, 4  ;;  %v1461_v39 = vsel %vm316_vm0, %v1460_v12, %v3276_v0  ;;  %v3361_v37 = vld [vmem:[%s2707_s30 + $0x3d0] sm:$0xff] }
  0x75   : > { %v588_v59 = vrot.slane %v3271_v10, 4  ;;  %v3308_v11 = vperm.slane %v1437_v13, %v2722_v7  ;;  %v612_v54 = vrot.slane %v3295_v51, 4  ;;  %v3318_v57 = vperm.slane %v1449_v26, %v2722_v7  ;;  %v3378_v26 = vld [vmem:[%s2707_s30 + $0x298] sm:$0xff]  ;;  %4810 = vst [vmem:[#allocation9_spill] sm:$0xff] %v3421_v23 }
  0x76   : > { %v652_v5 = vrot.slane %v3305_v63, 4  ;;  %v3340_v8 = vperm.slane %v1461_v39, %v2722_v7  ;;  %v1473_v31 = vsel %vm316_vm0, %v1472_v32, %v3299_v34  ;;  %v664_v44 = vrot.slane %v3334_v55, 4  ;;  %v3386_v39 = vld [vmem:[%s2707_s30 + $0x218] sm:$0xff]  ;;  %4812 = vst [vmem:[#allocation11_spill] sm:$0xff] %v3434_v24 }
  0x77   : > { %v589_v21 = vsel %vm316_vm0, %v588_v59, %v3250_v38  ;;  %v613_v6 = vsel %vm316_vm0, %v612_v54, %v3284_v1  ;;  %v1484_v41 = vrot.slane %v3318_v57, 4  ;;  %v3352_v42 = vperm.slane %v1473_v31, %v2722_v7 }
  0x78   : > { %v3325_v33 = vperm.slane %v589_v21, %v2745_v19  ;;  %v3349_v14 = vperm.slane %v613_v6, %v2745_v19  ;;  %v653_v49 = vsel %vm316_vm0, %v652_v5, %v3322_v45  ;;  %v676_v13 = vrot.slane %v3346_v27, 4  ;;  %v3389_v5 = vld [vmem:[%s2707_s30 + $0x2d8] sm:$0xff] }
  0x79   : > { %v1485_v61 = vsel %vm316_vm0, %v1484_v41, %v3308_v11  ;;  %v3369_v28 = vperm.slane %v653_v49, %v2722_v7  ;;  %v1508_v59 = vrot.slane %v3352_v42, 4  ;;  %v665_v12 = vsel %vm316_vm0, %v664_v44, %v3331_v22  ;;  %v3404_v44 = vld [vmem:[%s2707_s30 + $0x398] sm:$0xff] }
  0x7a   : > { %v636_v18 = vrot.slane %v3349_v14, 4  ;;  %v1491_v9 = vperm.slane %v1485_v61, %v2745_v19  ;;  %v688_v54 = vrot.slane %v3361_v37, 4  ;;  %v3396_v41 = vperm.slane %v665_v12, %v2722_v7  ;;  %v3401_v61 = vld [vmem:[%s2707_s30 + $0x258] sm:$0xff]  ;;  %4809 = vst [vmem:[#allocation10_spill] sm:$0xff] %v3404_v44 }
  0x7b   : > { %v1509_v31 = vsel %vm316_vm0, %v1508_v59, %v3340_v8  ;;  %v677_v49 = vsel %vm316_vm0, %v676_v13, %v3355_v47  ;;  %v1548_v12 = vrot.slane %v3378_v26, 4  ;;  %v590_v48 = vrot.slane %v3250_v38, 4 }
  0x7c   : > { %v637_v6 = vsel %vm316_vm0, %v636_v18, %v3325_v33  ;;  %v1515_v32 = vperm.slane %v1509_v31, %v2745_v19  ;;  %v3409_v18 = vperm.slane %v677_v49, %v2722_v7  ;;  %v689_v59 = vsel %vm316_vm0, %v688_v54, %v3358_v36  ;;  %v3424_v49 = vld [vmem:[%s2707_s30 + $0x3d8] sm:$0xff] }
  0x7d   : > { %2140 = vst [vmem:[%s2906_s17 + $0x100] sm:$0xff] %v637_v6  ;;  %v3415_v21 = vperm.slane %v689_v59, %v2722_v7  ;;  %v700_v13 = vrot.slane %v3396_v41, 4  ;;  %v1560_v6 = vrot.slane %v3389_v5, 4  ;;  %v1549_v54 = vsel %vm316_vm0, %v1548_v12, %v3386_v39 }
  0x7e   : > { %v1532_v31 = vrot.slane %v1515_v32, 4  ;;  %4811 = vst [vmem:[#allocation12_spill] sm:$0xff] %v3424_v49  ;;  %v1572_v59 = vrot.slane %v3404_v44, 4  ;;  %v1555_v52 = vperm.slane %v1549_v54, %v2722_v7 }
  0x7f   : > { %v701_v16 = vsel %vm316_vm0, %v700_v13, %v3369_v28  ;;  %v724_v4 = vrot.slane %v3415_v21, 4  ;;  %v1561_v35 = vsel %vm316_vm0, %v1560_v6, %v3401_v61  ;;  %v1584_v6 = vrot.slane %v3424_v49, 4 }
  0x80   : > { %v1533_v53 = vsel %vm316_vm0, %v1532_v31, %v1491_v9  ;;  %v707_v12 = vperm.slane %v701_v16, %v2745_v19  ;;  %v1567_v40 = vperm.slane %v1561_v35, %v2722_v7  ;;  %v1573_v2 = vsel %vm316_vm0, %v1572_v59, %v3421_v23 }
  0x81   : > { %2141 = vst [vmem:[%s2906_s17 + $0x108] sm:$0xff] %v1533_v53  ;;  %v725_v13 = vsel %vm316_vm0, %v724_v4, %v3409_v18  ;;  %v1579_v54 = vperm.slane %v1573_v2, %v2722_v7  ;;  %v638_v35 = vrot.slane %v3325_v33, 4  ;;  %v1585_v53 = vsel %vm316_vm0, %v1584_v6, %v3434_v24 }
  0x82   : > { %v731_v31 = vperm.slane %v725_v13, %v2745_v19  ;;  %v1596_v44 = vrot.slane %v1567_v40, 4  ;;  %v1534_v59 = vrot.slane %v1491_v9, 4  ;;  %v750_v4 = vrot.slane %v707_v12, 4 }
  0x83   : > { %v1591_v2 = vperm.slane %v1585_v53, %v2722_v7  ;;  %v639_v13 = vsel %vm316_vm0, %v3349_v14, %v638_v35  ;;  %v591_v6 = vsel %vm316_vm0, %v3271_v10, %v590_v48  ;;  %v614_v53 = vrot.slane %v3284_v1, 4 }
  0x84   : > { %v748_v23 = vrot.slane %v731_v31, 4  ;;  %v1597_v49 = vsel %vm316_vm0, %v1596_v44, %v1555_v52  ;;  %2144 = vst [vmem:[%s2906_s17 + $0x120] sm:$0xff] %v639_v13  ;;  %v1535_v33 = vsel %vm316_vm0, %v1515_v32, %v1534_v59  ;;  %v751_v9 = vsel %vm316_vm0, %v731_v31, %v750_v4 }
  0x85   : > { %v1603_v16 = vperm.slane %v1597_v49, %v2745_v19  ;;  %v1620_v24 = vrot.slane %v1591_v2, 4  ;;  %2145 = vst [vmem:[%s2906_s17 + $0x128] sm:$0xff] %v1535_v33  ;;  %v599_v44 = vperm.slane %v591_v6, %v2745_v19  ;;  %v1486_v49 = vrot.slane %v3308_v11, 4 }
  0x86   : > { %v749_v38 = vsel %vm316_vm0, %v748_v23, %v707_v12  ;;  %v1510_v35 = vrot.slane %v3340_v8, 4  ;;  %v702_v32 = vrot.slane %v3369_v28, 4  ;;  %2146 = vst [vmem:[%s2906_s17 + $0x130] sm:$0xff] %v751_v9  ;;  %v615_v48 = vsel %vm316_vm0, %v3295_v51, %v614_v53 }
  0x87   : > { %2142 = vst [vmem:[%s2906_s17 + $0x110] sm:$0xff] %v749_v38  ;;  %v1646_v14 = vrot.slane %v1603_v16, 4  ;;  %v1621_v31 = vsel %vm316_vm0, %v1620_v24, %v1579_v54  ;;  %v726_v10 = vrot.slane %v3409_v18, 4  ;;  %v1598_v23 = vrot.slane %v1555_v52, 4 }
  0x88   : > { %v1627_v1 = vperm.slane %v1621_v31, %v2745_v19  ;;  %v623_v12 = vperm.slane %v615_v48, %v2745_v19  ;;  %v1487_v11 = vsel %vm316_vm0, %v3318_v57, %v1486_v49  ;;  %v1511_v8 = vsel %vm316_vm0, %v3352_v42, %v1510_v35 }
  0x89   : > { %v1495_v24 = vperm.slane %v1487_v11, %v2745_v19  ;;  %v1519_v28 = vperm.slane %v1511_v8, %v2745_v19  ;;  %v703_v51 = vsel %vm316_vm0, %v3396_v41, %v702_v32  ;;  %v727_v52 = vsel %vm316_vm0, %v3415_v21, %v726_v10 }
  0x8a   : > { %v1644_v18 = vrot.slane %v1627_v1, 4  ;;  %v1647_v59 = vsel %vm316_vm0, %v1627_v1, %v1646_v14  ;;  %v640_v4 = vrot.slane %v623_v12, 4  ;;  %v711_v57 = vperm.slane %v703_v51, %v2745_v19 }
  0x8b   : > { %2147 = vst [vmem:[%s2906_s17 + $0x138] sm:$0xff] %v1647_v59  ;;  %v1536_v42 = vrot.slane %v1519_v28, 4  ;;  %v735_v13 = vperm.slane %v727_v52, %v2745_v19  ;;  %v1599_v33 = vsel %vm316_vm0, %v1567_v40, %v1598_v23  ;;  %v1622_v9 = vrot.slane %v1579_v54, 4 }
  0x8c   : > { %v1645_v41 = vsel %vm316_vm0, %v1644_v18, %v1603_v16  ;;  %v641_v6 = vsel %vm316_vm0, %v640_v4, %v599_v44  ;;  %v1607_v21 = vperm.slane %v1599_v33, %v2745_v19  ;;  %v642_v38 = vrot.slane %v599_v44, 4 }
  0x8d   : > { %2143 = vst [vmem:[%s2906_s17 + $0x118] sm:$0xff] %v1645_v41  ;;  %v1537_v53 = vsel %vm316_vm0, %v1536_v42, %v1495_v24  ;;  %v752_v14 = vrot.slane %v735_v13, 4  ;;  %v1623_v49 = vsel %vm316_vm0, %v1591_v2, %v1622_v9  ;;  %v1538_v35 = vrot.slane %v1495_v24, 4 }
  0x8e   : > { %2148 = vst [vmem:[%s2906_s17 + $0x140] sm:$0xff] %v641_v6  ;;  %v1631_v40 = vperm.slane %v1623_v49, %v2745_v19  ;;  %v643_v54 = vsel %vm316_vm0, %v623_v12, %v642_v38  ;;  %v754_v16 = vrot.slane %v711_v57, 4  ;;  %v1650_v32 = vrot.slane %v1607_v21, 4 }
  0x8f   : > { %2149 = vst [vmem:[%s2906_s17 + $0x148] sm:$0xff] %v1537_v53  ;;  %v753_v44 = vsel %vm316_vm0, %v752_v14, %v711_v57  ;;  %v1539_v31 = vsel %vm316_vm0, %v1519_v28, %v1538_v35  ;;  %v4813_v48 = vrot.slane %v3208_v3, 4  ;;  %v4814_v10 = vrot.slane %v3211_v43, 4 }
  0x90   : > { %2150 = vst [vmem:[%s2906_s17 + $0x150] sm:$0xff] %v753_v44  ;;  %v1648_v1 = vrot.slane %v1631_v40, 4  ;;  %v755_v12 = vsel %vm316_vm0, %v735_v13, %v754_v16  ;;  %v1651_v11 = vsel %vm316_vm0, %v1631_v40, %v1650_v32  ;;  %v4817_v28 = vrot.slane %v3254_v58, 4 }
  0x91   : > { %v543_v2 = vsel %vm316_vm0, %v3197_v60, %v4813_v48  ;;  %v555_v23 = vsel %vm316_vm0, %v3214_v46, %v4814_v10  ;;  %2152 = vst [vmem:[%s2906_s17 + $0x160] sm:$0xff] %v643_v54  ;;  %v4815_v60 = vrot.slane %v3230_v20, 4  ;;  %v4816_v46 = vrot.slane %v3233_v15, 4 }
  0x92   : > { %v3520_v8 = vperm.slane %v543_v2, %v2722_v7  ;;  %v3524_v3 = vperm.slane %v555_v23, %v2722_v7  ;;  %v1439_v51 = vsel %vm316_vm0, %v3245_v30, %v4817_v28  ;;  %v1649_v52 = vsel %vm316_vm0, %v1648_v1, %v1607_v21  ;;  %2153 = vst [vmem:[%s2906_s17 + $0x168] sm:$0xff] %v1539_v31  ;;  %v4829_v2 = vld [vmem:[#allocation10_spill] sm:$0xff] }
  0x93   : > { %v567_v43 = vsel %vm316_vm0, %v3222_v29, %v4815_v60  ;;  %v579_v24 = vsel %vm316_vm0, %v3236_v25, %v4816_v46  ;;  %v3547_v29 = vperm.slane %v1439_v51, %v2722_v7  ;;  %2151 = vst [vmem:[%s2906_s17 + $0x158] sm:$0xff] %v1649_v52  ;;  %v4818_v25 = vrot.slane %v3266_v56, 4  ;;  %v4832_v46 = vld [vmem:[#allocation12_spill] sm:$0xff] }
  0x94   : > { %v3541_v18 = vperm.slane %v567_v43, %v2722_v7  ;;  %v3544_v20 = vperm.slane %v579_v24, %v2722_v7  ;;  %v600_v15 = vrot.slane %v3524_v3, 4  ;;  %v4819_v58 = vrot.slane %v3276_v0, 4  ;;  %2154 = vst [vmem:[%s2906_s17 + $0x170] sm:$0xff] %v755_v12 }
  0x95   : > { %v1451_v30 = vsel %vm316_vm0, %v3257_v62, %v4818_v25  ;;  %v4820_v4 = vrot.slane %v3299_v34, 4  ;;  %2155 = vst [vmem:[%s2906_s17 + $0x178] sm:$0xff] %v1651_v11  ;;  %v4822_v34 = vrot.slane %v3331_v22, 4  ;;  %v4823_v9 = vrot.slane %v3355_v47, 4 }
  0x96   : > { %v1463_v59 = vsel %vm316_vm0, %v3279_v17, %v4819_v58  ;;  %v624_v42 = vrot.slane %v3544_v20, 4  ;;  %v3566_v13 = vperm.slane %v1451_v30, %v2722_v7  ;;  %v601_v0 = vsel %vm316_vm0, %v600_v15, %v3520_v8 }
  0x97   : > { %v1475_v57 = vsel %vm316_vm0, %v3289_v50, %v4820_v4  ;;  %v3569_v56 = vperm.slane %v1463_v59, %v2722_v7  ;;  %v4821_v17 = vrot.slane %v3322_v45, 4  ;;  %v667_v33 = vsel %vm316_vm0, %v3334_v55, %v4822_v34 }
  0x98   : > { %v3572_v62 = vperm.slane %v1475_v57, %v2722_v7  ;;  %v679_v41 = vsel %vm316_vm0, %v3346_v27, %v4823_v9  ;;  %v607_v6 = vperm.slane %v601_v0, %v2745_v19  ;;  %v625_v21 = vsel %vm316_vm0, %v624_v42, %v3541_v18 }
  0x99   : > { %v655_v50 = vsel %vm316_vm0, %v3305_v63, %v4821_v17  ;;  %v1496_v45 = vrot.slane %v3566_v13, 4  ;;  %v631_v63 = vperm.slane %v625_v21, %v2745_v19  ;;  %v3599_v55 = vperm.slane %v667_v33, %v2722_v7 }
  0x9a   : > { %v1520_v38 = vrot.slane %v3572_v62, 4  ;;  %v3596_v22 = vperm.slane %v655_v50, %v2722_v7  ;;  %v3602_v47 = vperm.slane %v679_v41, %v2722_v7  ;;  %v4824_v14 = vrot.slane %v3358_v36, 4 }
  0x9b   : > { %v1497_v27 = vsel %vm316_vm0, %v1496_v45, %v3547_v29  ;;  %v4825_v35 = vrot.slane %v3386_v39, 4  ;;  %v644_v54 = vrot.slane %v631_v63, 4  ;;  %v712_v31 = vrot.slane %v3599_v55, 4  ;;  %v4827_v39 = vld [vmem:[#allocation9_spill] sm:$0xff] }
  0x9c   : > { %v1521_v53 = vsel %vm316_vm0, %v1520_v38, %v3569_v56  ;;  %v691_v49 = vsel %vm316_vm0, %v3361_v37, %v4824_v14  ;;  %v1503_v16 = vperm.slane %v1497_v27, %v2745_v19  ;;  %v4826_v36 = vrot.slane %v3401_v61, 4 }
  0x9d   : > { %v1551_v40 = vsel %vm316_vm0, %v3378_v26, %v4825_v35  ;;  %v1527_v32 = vperm.slane %v1521_v53, %v2745_v19  ;;  %v699_v44 = vperm.slane %v691_v49, %v2722_v7  ;;  %v4828_v26 = vrot.slane %v4827_v39, 4 }
  0x9e   : > { %v3621_v48 = vperm.slane %v1551_v40, %v2722_v7  ;;  %v1563_v37 = vsel %vm316_vm0, %v3389_v5, %v4826_v36  ;;  %v645_v23 = vsel %vm316_vm0, %v644_v54, %v607_v6  ;;  %v713_v61 = vsel %vm316_vm0, %v712_v31, %v3596_v22  ;;  %v4830_v5 = vld [vmem:[#allocation11_spill] sm:$0xff]  ;;  %v3693_v31 = vld [vmem:[%s2707_s30 + $0xa0] sm:$0xff] }
  0x9f   : > { %v1575_v10 = vsel %vm316_vm0, %v4829_v2, %v4828_v26  ;;  %v1540_v1 = vrot.slane %v1527_v32, 4  ;;  %v736_v12 = vrot.slane %v699_v44, 4  ;;  %v1571_v11 = vperm.slane %v1563_v37, %v2722_v7  ;;  %2156 = vst [vmem:[%s2906_s17 + $0x180] sm:$0xff] %v645_v23  ;;  %v3704_v2 = vld [vmem:[%s2707_s30 + $0x20] sm:$0xff] }
  0xa0   : > { %v3637_v60 = vperm.slane %v1575_v10, %v2722_v7  ;;  %v4831_v43 = vrot.slane %v4830_v5, 4  ;;  %v646_v28 = vrot.slane %v607_v6, 4  ;;  %v719_v52 = vperm.slane %v713_v61, %v2745_v19 }
  0xa1   : > { %v1541_v51 = vsel %vm316_vm0, %v1540_v1, %v1503_v16  ;;  %v737_v15 = vsel %vm316_vm0, %v736_v12, %v3602_v47  ;;  %v1608_v58 = vrot.slane %v1571_v11, 4  ;;  %v1542_v4 = vrot.slane %v1503_v16, 4  ;;  %v3707_v12 = vld [vmem:[%s2707_s30 + $0x60] sm:$0xff] }
  0xa2   : > { %v1587_v24 = vsel %vm316_vm0, %v4832_v46, %v4831_v43  ;;  %2157 = vst [vmem:[%s2906_s17 + $0x188] sm:$0xff] %v1541_v51  ;;  %v743_v30 = vperm.slane %v737_v15, %v2745_v19  ;;  %v647_v59 = vsel %vm316_vm0, %v631_v63, %v646_v28  ;;  %v758_v42 = vrot.slane %v719_v52, 4 }
  0xa3   : > { %v3648_v25 = vperm.slane %v1587_v24, %v2722_v7  ;;  %2160 = vst [vmem:[%s2906_s17 + $0x1a0] sm:$0xff] %v647_v59  ;;  %v602_v0 = vrot.slane %v3520_v8, 4  ;;  %v626_v17 = vrot.slane %v3541_v18, 4  ;;  %v1609_v34 = vsel %vm316_vm0, %v1608_v58, %v3621_v48  ;;  %v3718_v24 = vld [vmem:[%s2707_s30 + $0x1a0] sm:$0xff] }
  0xa4   : > { %v756_v50 = vrot.slane %v743_v30, 4  ;;  %v1543_v33 = vsel %vm316_vm0, %v1527_v32, %v1542_v4  ;;  %v1498_v9 = vrot.slane %v3547_v29, 4  ;;  %v1615_v41 = vperm.slane %v1609_v34, %v2745_v19  ;;  %v3732_v58 = vld [vmem:[%s2707_s30 + $0x1e0] sm:$0xff] }
  0xa5   : > { %v1632_v57 = vrot.slane %v3648_v25, 4  ;;  %2161 = vst [vmem:[%s2906_s17 + $0x1a8] sm:$0xff] %v1543_v33  ;;  %v759_v21 = vsel %vm316_vm0, %v743_v30, %v758_v42  ;;  %v603_v8 = vsel %vm316_vm0, %v3524_v3, %v602_v0  ;;  %v627_v29 = vsel %vm316_vm0, %v3544_v20, %v626_v17  ;;  %v3726_v30 = vld [vmem:[%s2707_s30 + $0x120] sm:$0xff]  ;;  %v3741_v0 = vld [vmem:[%s2707_s30 + $0xa8] sm:$0xff] }
  0xa6   : > { %v757_v18 = vsel %vm316_vm0, %v756_v50, %v719_v52  ;;  %2162 = vst [vmem:[%s2906_s17 + $0x1b0] sm:$0xff] %v759_v21  ;;  %v611_v38 = vperm.slane %v603_v8, %v2745_v19  ;;  %v1654_v63 = vrot.slane %v1615_v41, 4  ;;  %v635_v27 = vperm.slane %v627_v29, %v2745_v19 }
  0xa7   : > { %v1633_v6 = vsel %vm316_vm0, %v1632_v57, %v3637_v60  ;;  %2158 = vst [vmem:[%s2906_s17 + $0x190] sm:$0xff] %v757_v18  ;;  %v1499_v53 = vsel %vm316_vm0, %v3566_v13, %v1498_v9  ;;  %v1522_v3 = vrot.slane %v3569_v56, 4  ;;  %v714_v35 = vrot.slane %v3596_v22, 4  ;;  %v3750_v9 = vld [vmem:[%s2707_s30 + $0x28] sm:$0xff] }
  0xa8   : > { %v1639_v45 = vperm.slane %v1633_v6, %v2745_v19  ;;  %v1507_v49 = vperm.slane %v1499_v53, %v2745_v19  ;;  %v738_v40 = vrot.slane %v3602_v47, 4  ;;  %v648_v54 = vrot.slane %v635_v27, 4  ;;  %v3775_v53 = vld [vmem:[%s2707_s30 + $0x1a8] sm:$0xff] }
  0xa9   : > { %v1523_v16 = vsel %vm316_vm0, %v3572_v62, %v1522_v3  ;;  %v1610_v32 = vrot.slane %v3621_v48, 4  ;;  %v715_v22 = vsel %vm316_vm0, %v3599_v55, %v714_v35  ;;  %v650_v26 = vrot.slane %v611_v38, 4  ;;  %v3785_v35 = vld [vmem:[%s2707_s30 + $0x1e8] sm:$0xff] }
  0xaa   : > { %v1652_v14 = vrot.slane %v1639_v45, 4  ;;  %v1655_v20 = vsel %vm316_vm0, %v1639_v45, %v1654_v63  ;;  %v1531_v56 = vperm.slane %v1523_v16, %v2745_v19  ;;  %v739_v47 = vsel %vm316_vm0, %v699_v44, %v738_v40  ;;  %v3762_v45 = vld [vmem:[%s2707_s30 + $0x68] sm:$0xff] }
  0xab   : > { %2163 = vst [vmem:[%s2906_s17 + $0x1b8] sm:$0xff] %v1655_v20  ;;  %v649_v62 = vsel %vm316_vm0, %v648_v54, %v611_v38  ;;  %v723_v48 = vperm.slane %v715_v22, %v2745_v19  ;;  %v747_v36 = vperm.slane %v739_v47, %v2745_v19  ;;  %v1611_v37 = vsel %vm316_vm0, %v1571_v11, %v1610_v32  ;;  %v3710_v11 = vld [vmem:[%s2707_s30 + $0xe0] sm:$0xff]  ;;  %v3795_v32 = vld [vmem:[%s2707_s30 + $0x168] sm:$0xff] }
  0xac   : > { %v1653_v13 = vsel %vm316_vm0, %v1652_v14, %v1615_v41  ;;  %2164 = vst [vmem:[%s2906_s17 + $0x1c0] sm:$0xff] %v649_v62  ;;  %v1544_v39 = vrot.slane %v1531_v56, 4  ;;  %v1619_v55 = vperm.slane %v1611_v37, %v2745_v19  ;;  %v1634_v44 = vrot.slane %v3637_v60, 4  ;;  %v3753_v41 = vld [vmem:[%s2707_s30 + $0xe8] sm:$0xff]  ;;  %v3801_v22 = vld [vmem:[%s2707_s30 + $0x2a0] sm:$0xff] }
  0xad   : > { %2159 = vst [vmem:[%s2906_s17 + $0x198] sm:$0xff] %v1653_v13  ;;  %v760_v10 = vrot.slane %v747_v36, 4  ;;  %v1546_v23 = vrot.slane %v1507_v49, 4  ;;  %v762_v1 = vrot.slane %v723_v48, 4  ;;  %v764_v61 = vrot.slane %v3693_v31, 4 }
  0xae   : > { %v1545_v5 = vsel %vm316_vm0, %v1544_v39, %v1507_v49  ;;  %v1635_v60 = vsel %vm316_vm0, %v3648_v25, %v1634_v44  ;;  %v651_v43 = vsel %vm316_vm0, %v635_v27, %v650_v26  ;;  %v1658_v46 = vrot.slane %v1619_v55, 4  ;;  %v3729_v25 = vld [vmem:[%s2707_s30 + $0x160] sm:$0xff]  ;;  %v3772_v27 = vld [vmem:[%s2707_s30 + $0x128] sm:$0xff] }
  0xaf   : > { %2165 = vst [vmem:[%s2906_s17 + $0x1c8] sm:$0xff] %v1545_v5  ;;  %v761_v28 = vsel %vm316_vm0, %v760_v10, %v723_v48  ;;  %v1643_v51 = vperm.slane %v1635_v60, %v2745_v19  ;;  %v1547_v52 = vsel %vm316_vm0, %v1531_v56, %v1546_v23  ;;  %v763_v15 = vsel %vm316_vm0, %v747_v36, %v762_v1  ;;  %v3818_v26 = vld [vmem:[%s2707_s30 + $0x220] sm:$0xff]  ;;  %v3930_v56 = vld [vmem:[%s2707_s30 + $0x368] sm:$0xff] }
  0xb0   : > { %2166 = vst [vmem:[%s2906_s17 + $0x1d0] sm:$0xff] %v761_v28  ;;  %v765_v59 = vsel %vm316_vm0, %v764_v61, %v3704_v2  ;;  %v776_v57 = vrot.slane %v3710_v11, 4  ;;  %v788_v33 = vrot.slane %v3718_v24, 4  ;;  %v800_v8 = vrot.slane %v3732_v58, 4  ;;  %v3827_v61 = vld [vmem:[%s2707_s30 + $0x260] sm:$0xff] }
  0xb1   : > { %v1656_v17 = vrot.slane %v1643_v51, 4  ;;  %2168 = vst [vmem:[%s2906_s17 + $0x1e0] sm:$0xff] %v651_v43  ;;  %v1659_v50 = vsel %vm316_vm0, %v1643_v51, %v1658_v46  ;;  %v3746_v34 = vperm.slane %v765_v59, %v2722_v7  ;;  %v1660_v3 = vrot.slane %v3741_v0, 4  ;;  %v3830_v5 = vld [vmem:[%s2707_s30 + $0x2e0] sm:$0xff] }
  0xb2   : > { %2169 = vst [vmem:[%s2906_s17 + $0x1e8] sm:$0xff] %v1547_v52  ;;  %v777_v6 = vsel %vm316_vm0, %v776_v57, %v3707_v12  ;;  %v789_v63 = vsel %vm316_vm0, %v788_v33, %v3726_v30  ;;  %v801_v49 = vsel %vm316_vm0, %v800_v8, %v3729_v25  ;;  %v1672_v20 = vrot.slane %v3753_v41, 4  ;;  %v3842_v52 = vld [vmem:[%s2707_s30 + $0x3a0] sm:$0xff] }
  0xb3   : > { %v1657_v38 = vsel %vm316_vm0, %v1656_v17, %v1619_v55  ;;  %2170 = vst [vmem:[%s2906_s17 + $0x1f0] sm:$0xff] %v763_v15  ;;  %v3767_v29 = vperm.slane %v777_v6, %v2722_v7  ;;  %v3780_v14 = vperm.slane %v789_v63, %v2722_v7  ;;  %v3791_v54 = vperm.slane %v801_v49, %v2722_v7  ;;  %v3851_v57 = vld [vmem:[%s2707_s30 + $0x320] sm:$0xff]  ;;  %v3917_v6 = vld [vmem:[%s2707_s30 + $0x328] sm:$0xff] }
  0xb4   : > { %2167 = vst [vmem:[%s2906_s17 + $0x1d8] sm:$0xff] %v1657_v38  ;;  %v1661_v13 = vsel %vm316_vm0, %v1660_v3, %v3750_v9  ;;  %v1673_v62 = vsel %vm316_vm0, %v1672_v20, %v3762_v45  ;;  %v1684_v48 = vrot.slane %v3775_v53, 4  ;;  %v1696_v44 = vrot.slane %v3785_v35, 4  ;;  %v3854_v17 = vld [vmem:[%s2707_s30 + $0x360] sm:$0xff] }
  0xb5   : > { %2171 = vst [vmem:[%s2906_s17 + $0x1f8] sm:$0xff] %v1659_v50  ;;  %v812_v16 = vrot.slane %v3767_v29, 4  ;;  %v3804_v47 = vperm.slane %v1661_v13, %v2722_v7  ;;  %v836_v39 = vrot.slane %v3791_v54, 4  ;;  %v3814_v55 = vperm.slane %v1673_v62, %v2722_v7  ;;  %v3857_v50 = vld [vmem:[%s2707_s30 + $0x3e0] sm:$0xff]  ;;  %v3874_v62 = vld [vmem:[%s2707_s30 + $0x2a8] sm:$0xff] }
  0xb6   : > { %v1685_v23 = vsel %vm316_vm0, %v1684_v48, %v3772_v27  ;;  %v876_v60 = vrot.slane %v3801_v22, 4  ;;  %v1697_v28 = vsel %vm316_vm0, %v1696_v44, %v3795_v32  ;;  %v888_v63 = vrot.slane %v3830_v5, 4  ;;  %4834 = vst [vmem:[#allocation10_spill] sm:$0xff] %v3917_v6 }
  0xb7   : > { %v813_v37 = vsel %vm316_vm0, %v812_v16, %v3746_v34  ;;  %v837_v43 = vsel %vm316_vm0, %v836_v39, %v3780_v14  ;;  %v3836_v46 = vperm.slane %v1685_v23, %v2722_v7  ;;  %v1708_v51 = vrot.slane %v3814_v55, 4  ;;  %v3882_v23 = vld [vmem:[%s2707_s30 + $0x228] sm:$0xff]  ;;  %4836 = vst [vmem:[#allocation12_spill] sm:$0xff] %v3930_v56 }
  0xb8   : > { %v3821_v10 = vperm.slane %v813_v37, %v2745_v19  ;;  %v3845_v15 = vperm.slane %v837_v43, %v2745_v19  ;;  %v3848_v59 = vperm.slane %v1697_v28, %v2722_v7  ;;  %v877_v33 = vsel %vm316_vm0, %v876_v60, %v3818_v26  ;;  %v3885_v60 = vld [vmem:[%s2707_s30 + $0x2e8] sm:$0xff] }
  0xb9   : > { %v1709_v8 = vsel %vm316_vm0, %v1708_v51, %v3804_v47  ;;  %v3865_v38 = vperm.slane %v877_v33, %v2722_v7  ;;  %v900_v13 = vrot.slane %v3842_v52, 4  ;;  %v889_v48 = vsel %vm316_vm0, %v888_v63, %v3827_v61  ;;  %v3900_v63 = vld [vmem:[%s2707_s30 + $0x3a8] sm:$0xff] }
  0xba   : > { %v860_v49 = vrot.slane %v3845_v15, 4  ;;  %v1715_v20 = vperm.slane %v1709_v8, %v2745_v19  ;;  %v1732_v16 = vrot.slane %v3848_v59, 4  ;;  %v912_v39 = vrot.slane %v3857_v50, 4  ;;  %v3897_v8 = vld [vmem:[%s2707_s30 + $0x268] sm:$0xff]  ;;  %4833 = vst [vmem:[#allocation9_spill] sm:$0xff] %v3900_v63 }
  0xbb   : > { %v3892_v51 = vperm.slane %v889_v48, %v2722_v7  ;;  %v901_v33 = vsel %vm316_vm0, %v900_v13, %v3851_v57  ;;  %v1772_v48 = vrot.slane %v3874_v62, 4  ;;  %v814_v4 = vrot.slane %v3746_v34, 4 }
  0xbc   : > { %v861_v43 = vsel %vm316_vm0, %v860_v49, %v3821_v10  ;;  %v1733_v28 = vsel %vm316_vm0, %v1732_v16, %v3836_v46  ;;  %v3905_v49 = vperm.slane %v901_v33, %v2722_v7  ;;  %v913_v16 = vsel %vm316_vm0, %v912_v39, %v3854_v17  ;;  %v3920_v33 = vld [vmem:[%s2707_s30 + $0x3e8] sm:$0xff] }
  0xbd   : > { %2172 = vst [vmem:[%s2906_s17 + $0x200] sm:$0xff] %v861_v43  ;;  %v1739_v44 = vperm.slane %v1733_v28, %v2745_v19  ;;  %v3911_v37 = vperm.slane %v913_v16, %v2722_v7  ;;  %v924_v13 = vrot.slane %v3892_v51, 4  ;;  %v1784_v43 = vrot.slane %v3885_v60, 4 }
  0xbe   : > { %4835 = vst [vmem:[#allocation11_spill] sm:$0xff] %v3920_v33  ;;  %v1773_v39 = vsel %vm316_vm0, %v1772_v48, %v3882_v23  ;;  %v1796_v16 = vrot.slane %v3900_v63, 4 }
  0xbf   : > { %v1756_v28 = vrot.slane %v1739_v44, 4  ;;  %v925_v36 = vsel %vm316_vm0, %v924_v13, %v3865_v38  ;;  %v948_v3 = vrot.slane %v3911_v37, 4  ;;  %v1779_v40 = vperm.slane %v1773_v39, %v2722_v7 }
  0xc0   : > { %v1785_v18 = vsel %vm316_vm0, %v1784_v43, %v3897_v8  ;;  %v931_v48 = vperm.slane %v925_v36, %v2745_v19  ;;  %v1797_v42 = vsel %vm316_vm0, %v1796_v16, %v3917_v6  ;;  %v1808_v43 = vrot.slane %v3920_v33, 4 }
  0xc1   : > { %v1757_v21 = vsel %vm316_vm0, %v1756_v28, %v1715_v20  ;;  %v1791_v1 = vperm.slane %v1785_v18, %v2722_v7  ;;  %v949_v13 = vsel %vm316_vm0, %v948_v3, %v3905_v49  ;;  %v1803_v39 = vperm.slane %v1797_v42, %v2722_v7 }
  0xc2   : > { %2173 = vst [vmem:[%s2906_s17 + $0x208] sm:$0xff] %v1757_v21  ;;  %v955_v28 = vperm.slane %v949_v13, %v2745_v19  ;;  %v862_v18 = vrot.slane %v3821_v10, 4  ;;  %v1809_v21 = vsel %vm316_vm0, %v1808_v43, %v3930_v56  ;;  %v1758_v16 = vrot.slane %v1715_v20, 4 }
  0xc3   : > { %v1820_v63 = vrot.slane %v1791_v1, 4  ;;  %v974_v3 = vrot.slane %v931_v48, 4  ;;  %v1815_v42 = vperm.slane %v1809_v21, %v2722_v7  ;;  %v815_v43 = vsel %vm316_vm0, %v3767_v29, %v814_v4 }
  0xc4   : > { %v972_v6 = vrot.slane %v955_v28, 4  ;;  %v863_v13 = vsel %vm316_vm0, %v3845_v15, %v862_v18  ;;  %v1759_v10 = vsel %vm316_vm0, %v1739_v44, %v1758_v16  ;;  %v838_v21 = vrot.slane %v3780_v14, 4 }
  0xc5   : > { %v1821_v33 = vsel %vm316_vm0, %v1820_v63, %v1779_v40  ;;  %2176 = vst [vmem:[%s2906_s17 + $0x220] sm:$0xff] %v863_v13  ;;  %v975_v20 = vsel %vm316_vm0, %v955_v28, %v974_v3  ;;  %v1844_v56 = vrot.slane %v1815_v42, 4  ;;  %v823_v63 = vperm.slane %v815_v43, %v2745_v19 }
  0xc6   : > { %v1827_v36 = vperm.slane %v1821_v33, %v2745_v19  ;;  %v973_v34 = vsel %vm316_vm0, %v972_v6, %v931_v48  ;;  %2177 = vst [vmem:[%s2906_s17 + $0x228] sm:$0xff] %v1759_v10  ;;  %v1710_v33 = vrot.slane %v3804_v47, 4  ;;  %v1734_v18 = vrot.slane %v3836_v46, 4 }
  0xc7   : > { %2174 = vst [vmem:[%s2906_s17 + $0x210] sm:$0xff] %v973_v34  ;;  %v926_v44 = vrot.slane %v3865_v38, 4  ;;  %v1845_v28 = vsel %vm316_vm0, %v1844_v56, %v1803_v39  ;;  %v839_v4 = vsel %vm316_vm0, %v3791_v54, %v838_v21  ;;  %v950_v29 = vrot.slane %v3905_v49, 4 }
  0xc8   : > { %v1870_v15 = vrot.slane %v1827_v36, 4  ;;  %2178 = vst [vmem:[%s2906_s17 + $0x230] sm:$0xff] %v975_v20  ;;  %v1822_v6 = vrot.slane %v1779_v40, 4  ;;  %v1851_v14 = vperm.slane %v1845_v28, %v2745_v19  ;;  %v847_v48 = vperm.slane %v839_v4, %v2745_v19 }
  0xc9   : > { %v1711_v47 = vsel %vm316_vm0, %v3814_v55, %v1710_v33  ;;  %v1735_v46 = vsel %vm316_vm0, %v3848_v59, %v1734_v18  ;;  %v927_v54 = vsel %vm316_vm0, %v3892_v51, %v926_v44  ;;  %v951_v40 = vsel %vm316_vm0, %v3911_v37, %v950_v29 }
  0xca   : > { %v1719_v56 = vperm.slane %v1711_v47, %v2745_v19  ;;  %v1743_v38 = vperm.slane %v1735_v46, %v2745_v19  ;;  %v1868_v49 = vrot.slane %v1851_v14, 4  ;;  %v1871_v16 = vsel %vm316_vm0, %v1851_v14, %v1870_v15 }
  0xcb   : > { %v864_v3 = vrot.slane %v847_v48, 4  ;;  %v935_v55 = vperm.slane %v927_v54, %v2745_v19  ;;  %2179 = vst [vmem:[%s2906_s17 + $0x238] sm:$0xff] %v1871_v16  ;;  %v959_v13 = vperm.slane %v951_v40, %v2745_v19  ;;  %v1823_v10 = vsel %vm316_vm0, %v1791_v1, %v1822_v6 }
  0xcc   : > { %v1760_v59 = vrot.slane %v1743_v38, 4  ;;  %v1846_v20 = vrot.slane %v1803_v39, 4  ;;  %v1869_v51 = vsel %vm316_vm0, %v1868_v49, %v1827_v36  ;;  %v1831_v37 = vperm.slane %v1823_v10, %v2745_v19 }
  0xcd   : > { %v865_v43 = vsel %vm316_vm0, %v864_v3, %v823_v63  ;;  %v866_v34 = vrot.slane %v823_v63, 4  ;;  %2175 = vst [vmem:[%s2906_s17 + $0x218] sm:$0xff] %v1869_v51  ;;  %v976_v15 = vrot.slane %v959_v13, 4  ;;  %v1762_v18 = vrot.slane %v1719_v56, 4 }
  0xce   : > { %v1761_v21 = vsel %vm316_vm0, %v1760_v59, %v1719_v56  ;;  %v1847_v33 = vsel %vm316_vm0, %v1815_v42, %v1846_v20  ;;  %2180 = vst [vmem:[%s2906_s17 + $0x240] sm:$0xff] %v865_v43  ;;  %v978_v36 = vrot.slane %v935_v55, 4  ;;  %v1874_v44 = vrot.slane %v1831_v37, 4 }
  0xcf   : > { %v1855_v1 = vperm.slane %v1847_v33, %v2745_v19  ;;  %v867_v39 = vsel %vm316_vm0, %v847_v48, %v866_v34  ;;  %2181 = vst [vmem:[%s2906_s17 + $0x248] sm:$0xff] %v1761_v21  ;;  %v977_v63 = vsel %vm316_vm0, %v976_v15, %v935_v55  ;;  %v1763_v28 = vsel %vm316_vm0, %v1743_v38, %v1762_v18 }
  0xd0   : > { %v4837_v4 = vrot.slane %v3704_v2, 4  ;;  %v4838_v29 = vrot.slane %v3707_v12, 4  ;;  %2182 = vst [vmem:[%s2906_s17 + $0x250] sm:$0xff] %v977_v63  ;;  %v979_v48 = vsel %vm316_vm0, %v959_v13, %v978_v36  ;;  %v4841_v38 = vrot.slane %v3750_v9, 4 }
  0xd1   : > { %v1872_v14 = vrot.slane %v1855_v1, 4  ;;  %v1875_v47 = vsel %vm316_vm0, %v1855_v1, %v1874_v44  ;;  %2184 = vst [vmem:[%s2906_s17 + $0x260] sm:$0xff] %v867_v39  ;;  %v4843_v9 = vrot.slane %v3772_v27, 4  ;;  %v4844_v3 = vrot.slane %v3795_v32, 4 }
  0xd2   : > { %v767_v42 = vsel %vm316_vm0, %v3693_v31, %v4837_v4  ;;  %v779_v6 = vsel %vm316_vm0, %v3710_v11, %v4838_v29  ;;  %v4839_v31 = vrot.slane %v3726_v30, 4  ;;  %v4840_v11 = vrot.slane %v3729_v25, 4  ;;  %2185 = vst [vmem:[%s2906_s17 + $0x268] sm:$0xff] %v1763_v28 }
  0xd3   : > { %v4016_v46 = vperm.slane %v767_v42, %v2722_v7  ;;  %v4020_v2 = vperm.slane %v779_v6, %v2722_v7  ;;  %v1663_v54 = vsel %vm316_vm0, %v3741_v0, %v4841_v38  ;;  %v1873_v40 = vsel %vm316_vm0, %v1872_v14, %v1831_v37  ;;  %2186 = vst [vmem:[%s2906_s17 + $0x270] sm:$0xff] %v979_v48  ;;  %v4853_v42 = vld [vmem:[#allocation9_spill] sm:$0xff] }
  0xd4   : > { %v791_v12 = vsel %vm316_vm0, %v3718_v24, %v4839_v31  ;;  %v803_v56 = vsel %vm316_vm0, %v3732_v58, %v4840_v11  ;;  %v4043_v24 = vperm.slane %v1663_v54, %v2722_v7  ;;  %2183 = vst [vmem:[%s2906_s17 + $0x258] sm:$0xff] %v1873_v40  ;;  %v4842_v58 = vrot.slane %v3762_v45, 4  ;;  %v4856_v11 = vld [vmem:[#allocation11_spill] sm:$0xff] }
  0xd5   : > { %v4037_v49 = vperm.slane %v791_v12, %v2722_v7  ;;  %v4040_v30 = vperm.slane %v803_v56, %v2722_v7  ;;  %v824_v25 = vrot.slane %v4020_v2, 4  ;;  %v1687_v16 = vsel %vm316_vm0, %v3775_v53, %v4843_v9  ;;  %2187 = vst [vmem:[%s2906_s17 + $0x278] sm:$0xff] %v1875_v47 }
  0xd6   : > { %v1675_v0 = vsel %vm316_vm0, %v3753_v41, %v4842_v58  ;;  %v1699_v55 = vsel %vm316_vm0, %v3785_v35, %v4844_v3  ;;  %v4065_v45 = vperm.slane %v1687_v16, %v2722_v7  ;;  %v4845_v53 = vrot.slane %v3818_v26, 4 }
  0xd7   : > { %v848_v59 = vrot.slane %v4040_v30, 4  ;;  %v4062_v13 = vperm.slane %v1675_v0, %v2722_v7  ;;  %v4068_v41 = vperm.slane %v1699_v55, %v2722_v7  ;;  %v825_v27 = vsel %vm316_vm0, %v824_v25, %v4016_v46 }
  0xd8   : > { %v879_v35 = vsel %vm316_vm0, %v3801_v22, %v4845_v53  ;;  %v4846_v32 = vrot.slane %v3827_v61, 4  ;;  %v4847_v20 = vrot.slane %v3851_v57, 4  ;;  %v831_v43 = vperm.slane %v825_v27, %v2745_v19 }
  0xd9   : > { %v849_v37 = vsel %vm316_vm0, %v848_v59, %v4037_v49  ;;  %v1720_v26 = vrot.slane %v4062_v13, 4  ;;  %v1744_v34 = vrot.slane %v4068_v41, 4  ;;  %v4092_v61 = vperm.slane %v879_v35, %v2722_v7 }
  0xda   : > { %v891_v10 = vsel %vm316_vm0, %v3830_v5, %v4846_v32  ;;  %v903_v51 = vsel %vm316_vm0, %v3842_v52, %v4847_v20  ;;  %v855_v22 = vperm.slane %v849_v37, %v2745_v19  ;;  %v4848_v15 = vrot.slane %v3854_v17, 4 }
  0xdb   : > { %v4095_v5 = vperm.slane %v891_v10, %v2722_v7  ;;  %v4098_v57 = vperm.slane %v903_v51, %v2722_v7  ;;  %v1721_v52 = vsel %vm316_vm0, %v1720_v26, %v4043_v24  ;;  %v1745_v21 = vsel %vm316_vm0, %v1744_v34, %v4065_v45 }
  0xdc   : > { %v915_v33 = vsel %vm316_vm0, %v3857_v50, %v4848_v15  ;;  %v4849_v18 = vrot.slane %v3882_v23, 4  ;;  %v868_v39 = vrot.slane %v855_v22, 4  ;;  %v1727_v36 = vperm.slane %v1721_v52, %v2745_v19  ;;  %v4851_v23 = vld [vmem:[#allocation10_spill] sm:$0xff] }
  0xdd   : > { %v1751_v44 = vperm.slane %v1745_v21, %v2745_v19  ;;  %v923_v63 = vperm.slane %v915_v33, %v2722_v7  ;;  %v936_v28 = vrot.slane %v4095_v5, 4  ;;  %v4850_v17 = vrot.slane %v3897_v8, 4 }
  0xde   : > { %v1775_v1 = vsel %vm316_vm0, %v3874_v62, %v4849_v18  ;;  %v4852_v62 = vrot.slane %v4851_v23, 4  ;;  %v869_v6 = vsel %vm316_vm0, %v868_v39, %v831_v43  ;;  %v870_v38 = vrot.slane %v831_v43, 4 }
  0xdf   : > { %v4117_v4 = vperm.slane %v1775_v1, %v2722_v7  ;;  %v1787_v50 = vsel %vm316_vm0, %v3885_v60, %v4850_v17  ;;  %v1764_v14 = vrot.slane %v1751_v44, 4  ;;  %v960_v48 = vrot.slane %v923_v63, 4  ;;  %2188 = vst [vmem:[%s2906_s17 + $0x280] sm:$0xff] %v869_v6  ;;  %v4854_v60 = vld [vmem:[#allocation12_spill] sm:$0xff] }
  0xe0   : > { %v1799_v29 = vsel %vm316_vm0, %v4853_v42, %v4852_v62  ;;  %v1795_v47 = vperm.slane %v1787_v50, %v2722_v7  ;;  %v937_v8 = vsel %vm316_vm0, %v936_v28, %v4092_v61  ;;  %v4855_v12 = vrot.slane %v4854_v60, 4  ;;  %v4189_v28 = vld [vmem:[%s2707_s30 + $0xb0] sm:$0xff] }
  0xe1   : > { %v4133_v31 = vperm.slane %v1799_v29, %v2722_v7  ;;  %v1765_v54 = vsel %vm316_vm0, %v1764_v14, %v1727_v36  ;;  %v943_v40 = vperm.slane %v937_v8, %v2745_v19  ;;  %v961_v25 = vsel %vm316_vm0, %v960_v48, %v4098_v57  ;;  %v4200_v42 = vld [vmem:[%s2707_s30 + $0x30] sm:$0xff] }
  0xe2   : > { %v1811_v56 = vsel %vm316_vm0, %v4856_v11, %v4855_v12  ;;  %2189 = vst [vmem:[%s2906_s17 + $0x288] sm:$0xff] %v1765_v54  ;;  %v967_v0 = vperm.slane %v961_v25, %v2745_v19  ;;  %v1832_v9 = vrot.slane %v1795_v47, 4  ;;  %v871_v16 = vsel %vm316_vm0, %v855_v22, %v870_v38  ;;  %v4203_v48 = vld [vmem:[%s2707_s30 + $0x70] sm:$0xff] }
  0xe3   : > { %v4144_v58 = vperm.slane %v1811_v56, %v2722_v7  ;;  %v1766_v3 = vrot.slane %v1727_v36, 4  ;;  %2192 = vst [vmem:[%s2906_s17 + $0x2a0] sm:$0xff] %v871_v16  ;;  %v982_v59 = vrot.slane %v943_v40, 4  ;;  %v826_v27 = vrot.slane %v4016_v46, 4  ;;  %v4214_v56 = vld [vmem:[%s2707_s30 + $0x1b0] sm:$0xff] }
  0xe4   : > { %v850_v53 = vrot.slane %v4037_v49, 4  ;;  %v980_v35 = vrot.slane %v967_v0, 4  ;;  %v1833_v32 = vsel %vm316_vm0, %v1832_v9, %v4117_v4  ;;  %v1722_v20 = vrot.slane %v4043_v24, 4  ;;  %v4228_v9 = vld [vmem:[%s2707_s30 + $0x1f0] sm:$0xff] }
  0xe5   : > { %v1856_v55 = vrot.slane %v4144_v58, 4  ;;  %v1767_v10 = vsel %vm316_vm0, %v1751_v44, %v1766_v3  ;;  %v1839_v51 = vperm.slane %v1833_v32, %v2745_v19  ;;  %v983_v37 = vsel %vm316_vm0, %v967_v0, %v982_v59  ;;  %v4222_v0 = vld [vmem:[%s2707_s30 + $0x130] sm:$0xff] }
  0xe6   : > { %2193 = vst [vmem:[%s2906_s17 + $0x2a8] sm:$0xff] %v1767_v10  ;;  %v827_v46 = vsel %vm316_vm0, %v4020_v2, %v826_v27  ;;  %v981_v49 = vsel %vm316_vm0, %v980_v35, %v943_v40  ;;  %v851_v24 = vsel %vm316_vm0, %v4040_v30, %v850_v53  ;;  %v1723_v21 = vsel %vm316_vm0, %v4062_v13, %v1722_v20  ;;  %v4237_v27 = vld [vmem:[%s2707_s30 + $0xb8] sm:$0xff] }
  0xe7   : > { %v1857_v43 = vsel %vm316_vm0, %v1856_v55, %v4133_v31  ;;  %2194 = vst [vmem:[%s2906_s17 + $0x2b0] sm:$0xff] %v983_v37  ;;  %v835_v34 = vperm.slane %v827_v46, %v2745_v19  ;;  %v1878_v22 = vrot.slane %v1839_v51, 4  ;;  %v859_v52 = vperm.slane %v851_v24, %v2745_v19  ;;  %v4246_v20 = vld [vmem:[%s2707_s30 + $0x38] sm:$0xff] }
  0xe8   : > { %v1863_v26 = vperm.slane %v1857_v43, %v2745_v19  ;;  %2190 = vst [vmem:[%s2906_s17 + $0x290] sm:$0xff] %v981_v49  ;;  %v1746_v2 = vrot.slane %v4065_v45, 4  ;;  %v1731_v33 = vperm.slane %v1723_v21, %v2745_v19  ;;  %v938_v18 = vrot.slane %v4092_v61, 4  ;;  %v4271_v21 = vld [vmem:[%s2707_s30 + $0x1b8] sm:$0xff] }
  0xe9   : > { %v962_v1 = vrot.slane %v4098_v57, 4  ;;  %v872_v39 = vrot.slane %v859_v52, 4  ;;  %v1834_v44 = vrot.slane %v4117_v4, 4  ;;  %v874_v62 = vrot.slane %v835_v34, 4 }
  0xea   : > { %v1876_v15 = vrot.slane %v1863_v26, 4  ;;  %v1879_v30 = vsel %vm316_vm0, %v1863_v26, %v1878_v22  ;;  %v1747_v36 = vsel %vm316_vm0, %v4068_v41, %v1746_v2  ;;  %v939_v61 = vsel %vm316_vm0, %v4095_v5, %v938_v18  ;;  %v4258_v26 = vld [vmem:[%s2707_s30 + $0x78] sm:$0xff] }
  0xeb   : > { %2195 = vst [vmem:[%s2906_s17 + $0x2b8] sm:$0xff] %v1879_v30  ;;  %v1755_v45 = vperm.slane %v1747_v36, %v2745_v19  ;;  %v963_v57 = vsel %vm316_vm0, %v923_v63, %v962_v1  ;;  %v873_v41 = vsel %vm316_vm0, %v872_v39, %v835_v34  ;;  %v947_v4 = vperm.slane %v939_v61, %v2745_v19  ;;  %v4281_v18 = vld [vmem:[%s2707_s30 + $0x1f8] sm:$0xff]  ;;  %v4297_v61 = vld [vmem:[%s2707_s30 + $0x2b0] sm:$0xff] }
  0xec   : > { %v1877_v13 = vsel %vm316_vm0, %v1876_v15, %v1839_v51  ;;  %v971_v17 = vperm.slane %v963_v57, %v2745_v19  ;;  %v1835_v50 = vsel %vm316_vm0, %v1795_v47, %v1834_v44  ;;  %2196 = vst [vmem:[%s2906_s17 + $0x2c0] sm:$0xff] %v873_v41  ;;  %v1858_v63 = vrot.slane %v4133_v31, 4  ;;  %v4206_v47 = vld [vmem:[%s2707_s30 + $0xf0] sm:$0xff]  ;;  %v4249_v51 = vld [vmem:[%s2707_s30 + $0xf8] sm:$0xff] }
  0xed   : > { %2191 = vst [vmem:[%s2906_s17 + $0x298] sm:$0xff] %v1877_v13  ;;  %v1768_v23 = vrot.slane %v1755_v45, 4  ;;  %v1843_v5 = vperm.slane %v1835_v50, %v2745_v19  ;;  %v1770_v6 = vrot.slane %v1731_v33, 4  ;;  %v986_v14 = vrot.slane %v947_v4, 4  ;;  %v4291_v44 = vld [vmem:[%s2707_s30 + $0x178] sm:$0xff] }
  0xee   : > { %v984_v29 = vrot.slane %v971_v17, 4  ;;  %v988_v8 = vrot.slane %v4189_v28, 4  ;;  %v1859_v31 = vsel %vm316_vm0, %v4144_v58, %v1858_v63  ;;  %v875_v12 = vsel %vm316_vm0, %v859_v52, %v874_v62  ;;  %v4225_v58 = vld [vmem:[%s2707_s30 + $0x170] sm:$0xff]  ;;  %v4268_v52 = vld [vmem:[%s2707_s30 + $0x138] sm:$0xff] }
  0xef   : > { %v1769_v60 = vsel %vm316_vm0, %v1768_v23, %v1731_v33  ;;  %v1882_v11 = vrot.slane %v1843_v5, 4  ;;  %v1867_v54 = vperm.slane %v1859_v31, %v2745_v19  ;;  %v1771_v40 = vsel %vm316_vm0, %v1755_v45, %v1770_v6  ;;  %2200 = vst [vmem:[%s2906_s17 + $0x2e0] sm:$0xff] %v875_v12  ;;  %v4314_v62 = vld [vmem:[%s2707_s30 + $0x230] sm:$0xff]  ;;  %v4426_v45 = vld [vmem:[%s2707_s30 + $0x378] sm:$0xff] }
  0xf0   : > { %2197 = vst [vmem:[%s2906_s17 + $0x2c8] sm:$0xff] %v1769_v60  ;;  %v985_v38 = vsel %vm316_vm0, %v984_v29, %v947_v4  ;;  %v987_v25 = vsel %vm316_vm0, %v971_v17, %v986_v14  ;;  %v989_v16 = vsel %vm316_vm0, %v988_v8, %v4200_v42  ;;  %v1000_v55 = vrot.slane %v4206_v47, 4  ;;  %v4323_v8 = vld [vmem:[%s2707_s30 + $0x270] sm:$0xff] }
  0xf1   : > { %2198 = vst [vmem:[%s2906_s17 + $0x2d0] sm:$0xff] %v985_v38  ;;  %v1880_v53 = vrot.slane %v1867_v54, 4  ;;  %v1883_v35 = vsel %vm316_vm0, %v1867_v54, %v1882_v11  ;;  %v4242_v32 = vperm.slane %v989_v16, %v2722_v7  ;;  %v1012_v10 = vrot.slane %v4214_v56, 4  ;;  %v4326_v60 = vld [vmem:[%s2707_s30 + $0x2f0] sm:$0xff] }
  0xf2   : > { %2201 = vst [vmem:[%s2906_s17 + $0x2e8] sm:$0xff] %v1771_v40  ;;  %v1001_v43 = vsel %vm316_vm0, %v1000_v55, %v4203_v48  ;;  %v1024_v46 = vrot.slane %v4228_v9, 4  ;;  %v1884_v2 = vrot.slane %v4237_v27, 4  ;;  %v1896_v30 = vrot.slane %v4249_v51, 4  ;;  %v4338_v40 = vld [vmem:[%s2707_s30 + $0x3b0] sm:$0xff] }
  0xf3   : > { %v1881_v34 = vsel %vm316_vm0, %v1880_v53, %v1843_v5  ;;  %2202 = vst [vmem:[%s2906_s17 + $0x2f0] sm:$0xff] %v987_v25  ;;  %v4263_v24 = vperm.slane %v1001_v43, %v2722_v7  ;;  %v1013_v22 = vsel %vm316_vm0, %v1012_v10, %v4222_v0  ;;  %v1908_v4 = vrot.slane %v4271_v21, 4  ;;  %v4347_v55 = vld [vmem:[%s2707_s30 + $0x330] sm:$0xff]  ;;  %v4413_v43 = vld [vmem:[%s2707_s30 + $0x338] sm:$0xff] }
  0xf4   : > { %2199 = vst [vmem:[%s2906_s17 + $0x2d8] sm:$0xff] %v1881_v34  ;;  %v4276_v15 = vperm.slane %v1013_v22, %v2722_v7  ;;  %v1025_v33 = vsel %vm316_vm0, %v1024_v46, %v4225_v58  ;;  %v1885_v13 = vsel %vm316_vm0, %v1884_v2, %v4246_v20  ;;  %v1897_v41 = vsel %vm316_vm0, %v1896_v30, %v4258_v26  ;;  %v4350_v53 = vld [vmem:[%s2707_s30 + $0x370] sm:$0xff] }
  0xf5   : > { %2203 = vst [vmem:[%s2906_s17 + $0x2f8] sm:$0xff] %v1883_v35  ;;  %v4287_v39 = vperm.slane %v1025_v33, %v2722_v7  ;;  %v1036_v36 = vrot.slane %v4263_v24, 4  ;;  %v4300_v57 = vperm.slane %v1885_v13, %v2722_v7  ;;  %v4310_v5 = vperm.slane %v1897_v41, %v2722_v7  ;;  %v4353_v35 = vld [vmem:[%s2707_s30 + $0x3f0] sm:$0xff]  ;;  %v4370_v41 = vld [vmem:[%s2707_s30 + $0x2b8] sm:$0xff] }
  0xf6   : > { %v1920_v63 = vrot.slane %v4281_v18, 4  ;;  %v1909_v6 = vsel %vm316_vm0, %v1908_v4, %v4268_v52  ;;  %v1100_v31 = vrot.slane %v4297_v61, 4  ;;  %v1112_v22 = vrot.slane %v4326_v60, 4  ;;  %4858 = vst [vmem:[#allocation9_spill] sm:$0xff] %v4413_v43 }
  0xf7   : > { %v1037_v50 = vsel %vm316_vm0, %v1036_v36, %v4242_v32  ;;  %v1060_v23 = vrot.slane %v4287_v39, 4  ;;  %v4332_v11 = vperm.slane %v1909_v6, %v2722_v7  ;;  %v1932_v54 = vrot.slane %v4310_v5, 4  ;;  %v4378_v6 = vld [vmem:[%s2707_s30 + $0x238] sm:$0xff]  ;;  %4860 = vst [vmem:[#allocation11_spill] sm:$0xff] %v4426_v45 }
  0xf8   : > { %v4317_v29 = vperm.slane %v1037_v50, %v2745_v19  ;;  %v1921_v38 = vsel %vm316_vm0, %v1920_v63, %v4291_v44  ;;  %v1101_v10 = vsel %vm316_vm0, %v1100_v31, %v4314_v62  ;;  %v1124_v13 = vrot.slane %v4338_v40, 4  ;;  %v4381_v31 = vld [vmem:[%s2707_s30 + $0x2f8] sm:$0xff] }
  0xf9   : > { %v1061_v12 = vsel %vm316_vm0, %v1060_v23, %v4276_v15  ;;  %v4344_v16 = vperm.slane %v1921_v38, %v2722_v7  ;;  %v1933_v46 = vsel %vm316_vm0, %v1932_v54, %v4300_v57  ;;  %v4361_v34 = vperm.slane %v1101_v10, %v2722_v7 }
  0xfa   : > { %v4341_v25 = vperm.slane %v1061_v12, %v2745_v19  ;;  %v1939_v30 = vperm.slane %v1933_v46, %v2745_v19  ;;  %v1113_v4 = vsel %vm316_vm0, %v1112_v22, %v4323_v8  ;;  %v1136_v23 = vrot.slane %v4353_v35, 4  ;;  %v4393_v46 = vld [vmem:[%s2707_s30 + $0x278] sm:$0xff] }
  0xfb   : > { %v1956_v36 = vrot.slane %v4344_v16, 4  ;;  %v4388_v54 = vperm.slane %v1113_v4, %v2722_v7  ;;  %v1125_v10 = vsel %vm316_vm0, %v1124_v13, %v4347_v55  ;;  %v4396_v22 = vld [vmem:[%s2707_s30 + $0x3b8] sm:$0xff]  ;;  %v1996_v4 = vrot.slane %v4370_v41, 4 }
  0xfc   : > { %v1084_v33 = vrot.slane %v4341_v25, 4  ;;  %4857 = vst [vmem:[#allocation10_spill] sm:$0xff] %v4396_v22  ;;  %v1038_v3 = vrot.slane %v4242_v32, 4 }
  0xfd   : > { %v1957_v38 = vsel %vm316_vm0, %v1956_v36, %v4332_v11  ;;  %v1137_v36 = vsel %vm316_vm0, %v1136_v23, %v4350_v53  ;;  %v1148_v13 = vrot.slane %v4388_v54, 4  ;;  %v1997_v23 = vsel %vm316_vm0, %v1996_v4, %v4378_v6 }
  0xfe   : > { %v1085_v12 = vsel %vm316_vm0, %v1084_v33, %v4317_v29  ;;  %v1963_v63 = vperm.slane %v1957_v38, %v2745_v19  ;;  %v4401_v33 = vperm.slane %v1125_v10, %v2722_v7  ;;  %v4407_v50 = vperm.slane %v1137_v36, %v2722_v7  ;;  %v4416_v10 = vld [vmem:[%s2707_s30 + $0x3f8] sm:$0xff] }
  0xff   : > { %2204 = vst [vmem:[%s2906_s17 + $0x300] sm:$0xff] %v1085_v12  ;;  %v2008_v12 = vrot.slane %v4381_v31, 4  ;;  %v2020_v36 = vrot.slane %v4396_v22, 4  ;;  %v1149_v17 = vsel %vm316_vm0, %v1148_v13, %v4361_v34  ;;  %v2003_v1 = vperm.slane %v1997_v23, %v2722_v7 }
 0x100   : > { %v1980_v38 = vrot.slane %v1963_v63, 4  ;;  %4859 = vst [vmem:[#allocation12_spill] sm:$0xff] %v4416_v10  ;;  %v1172_v2 = vrot.slane %v4407_v50, 4  ;;  %v1155_v4 = vperm.slane %v1149_v17, %v2745_v19 }
 0x101   : > { %v2009_v49 = vsel %vm316_vm0, %v2008_v12, %v4393_v46  ;;  %v2021_v59 = vsel %vm316_vm0, %v2020_v36, %v4413_v43  ;;  %v2032_v12 = vrot.slane %v4416_v10, 4  ;;  %v1982_v36 = vrot.slane %v1939_v30, 4 }
 0x102   : > { %v1981_v37 = vsel %vm316_vm0, %v1980_v38, %v1939_v30  ;;  %v2015_v14 = vperm.slane %v2009_v49, %v2722_v7  ;;  %v1173_v13 = vsel %vm316_vm0, %v1172_v2, %v4401_v33  ;;  %v2027_v23 = vperm.slane %v2021_v59, %v2722_v7 }
 0x103   : > { %2205 = vst [vmem:[%s2906_s17 + $0x308] sm:$0xff] %v1981_v37  ;;  %v1179_v38 = vperm.slane %v1173_v13, %v2745_v19  ;;  %v1086_v49 = vrot.slane %v4317_v29, 4  ;;  %v2033_v37 = vsel %vm316_vm0, %v2032_v12, %v4426_v45  ;;  %v1198_v2 = vrot.slane %v1155_v4, 4 }
 0x104   : > { %v2044_v22 = vrot.slane %v2015_v14, 4  ;;  %v2039_v59 = vperm.slane %v2033_v37, %v2722_v7  ;;  %v1983_v29 = vsel %vm316_vm0, %v1963_v63, %v1982_v36  ;;  %v1039_v12 = vsel %vm316_vm0, %v4263_v24, %v1038_v3 }
 0x105   : > { %v1196_v43 = vrot.slane %v1179_v38, 4  ;;  %v1087_v13 = vsel %vm316_vm0, %v4341_v25, %v1086_v49  ;;  %v1199_v30 = vsel %vm316_vm0, %v1179_v38, %v1198_v2  ;;  %2209 = vst [vmem:[%s2906_s17 + $0x328] sm:$0xff] %v1983_v29  ;;  %v1062_v37 = vrot.slane %v4276_v15, 4 }
 0x106   : > { %v2045_v10 = vsel %vm316_vm0, %v2044_v22, %v2003_v1  ;;  %2208 = vst [vmem:[%s2906_s17 + $0x320] sm:$0xff] %v1087_v13  ;;  %v2068_v45 = vrot.slane %v2039_v59, 4  ;;  %v1047_v22 = vperm.slane %v1039_v12, %v2745_v19  ;;  %v1958_v49 = vrot.slane %v4332_v11, 4 }
 0x107   : > { %v2051_v17 = vperm.slane %v2045_v10, %v2745_v19  ;;  %v1197_v32 = vsel %vm316_vm0, %v1196_v43, %v1155_v4  ;;  %v1934_v10 = vrot.slane %v4300_v57, 4  ;;  %v1150_v63 = vrot.slane %v4361_v34, 4  ;;  %2210 = vst [vmem:[%s2906_s17 + $0x330] sm:$0xff] %v1199_v30 }
 0x108   : > { %2206 = vst [vmem:[%s2906_s17 + $0x310] sm:$0xff] %v1197_v32  ;;  %v2069_v38 = vsel %vm316_vm0, %v2068_v45, %v2027_v23  ;;  %v1063_v3 = vsel %vm316_vm0, %v4287_v39, %v1062_v37  ;;  %v1174_v24 = vrot.slane %v4401_v33, 4  ;;  %v2046_v43 = vrot.slane %v2003_v1, 4 }
 0x109   : > { %v2094_v25 = vrot.slane %v2051_v17, 4  ;;  %v2075_v15 = vperm.slane %v2069_v38, %v2745_v19  ;;  %v1071_v4 = vperm.slane %v1063_v3, %v2745_v19  ;;  %v1935_v57 = vsel %vm316_vm0, %v4310_v5, %v1934_v10 }
 0x10a   : > { %v1959_v11 = vsel %vm316_vm0, %v4344_v16, %v1958_v49  ;;  %v1943_v45 = vperm.slane %v1935_v57, %v2745_v19  ;;  %v1151_v39 = vsel %vm316_vm0, %v4388_v54, %v1150_v63  ;;  %v1175_v1 = vsel %vm316_vm0, %v4407_v50, %v1174_v24 }
 0x10b   : > { %v1967_v34 = vperm.slane %v1959_v11, %v2745_v19  ;;  %v2092_v33 = vrot.slane %v2075_v15, 4  ;;  %v2095_v36 = vsel %vm316_vm0, %v2075_v15, %v2094_v25  ;;  %v1088_v2 = vrot.slane %v1071_v4, 4 }
 0x10c   : > { %v1159_v5 = vperm.slane %v1151_v39, %v2745_v19  ;;  %2211 = vst [vmem:[%s2906_s17 + $0x338] sm:$0xff] %v2095_v36  ;;  %v1183_v13 = vperm.slane %v1175_v1, %v2745_v19  ;;  %v2047_v29 = vsel %vm316_vm0, %v2015_v14, %v2046_v43  ;;  %v2070_v30 = vrot.slane %v2027_v23, 4 }
 0x10d   : > { %v1984_v16 = vrot.slane %v1967_v34, 4  ;;  %v2093_v54 = vsel %vm316_vm0, %v2092_v33, %v2051_v17  ;;  %v1089_v12 = vsel %vm316_vm0, %v1088_v2, %v1047_v22  ;;  %v2055_v50 = vperm.slane %v2047_v29, %v2745_v19 }
 0x10e   : > { %v1090_v32 = vrot.slane %v1047_v22, 4  ;;  %2207 = vst [vmem:[%s2906_s17 + $0x318] sm:$0xff] %v2093_v54  ;;  %v1200_v25 = vrot.slane %v1183_v13, 4  ;;  %v2071_v10 = vsel %vm316_vm0, %v2039_v59, %v2070_v30  ;;  %v1986_v49 = vrot.slane %v1943_v45, 4 }
 0x10f   : > { %v1985_v37 = vsel %vm316_vm0, %v1984_v16, %v1943_v45  ;;  %2212 = vst [vmem:[%s2906_s17 + $0x340] sm:$0xff] %v1089_v12  ;;  %v2079_v14 = vperm.slane %v2071_v10, %v2745_v19  ;;  %v1202_v17 = vrot.slane %v1159_v5, 4  ;;  %v2098_v63 = vrot.slane %v2055_v50, 4 }
 0x110   : > { %v1091_v23 = vsel %vm316_vm0, %v1071_v4, %v1090_v32  ;;  %2213 = vst [vmem:[%s2906_s17 + $0x348] sm:$0xff] %v1985_v37  ;;  %v1201_v22 = vsel %vm316_vm0, %v1200_v25, %v1159_v5  ;;  %v1987_v38 = vsel %vm316_vm0, %v1967_v34, %v1986_v49  ;;  %v4861_v3 = vrot.slane %v4200_v42, 4 }
 0x111   : > { %v4862_v24 = vrot.slane %v4203_v48, 4  ;;  %2214 = vst [vmem:[%s2906_s17 + $0x350] sm:$0xff] %v1201_v22  ;;  %v2096_v15 = vrot.slane %v2079_v14, 4  ;;  %v1203_v4 = vsel %vm316_vm0, %v1183_v13, %v1202_v17  ;;  %v2099_v57 = vsel %vm316_vm0, %v2079_v14, %v2098_v63 }
 0x112   : > { %v991_v59 = vsel %vm316_vm0, %v4189_v28, %v4861_v3  ;;  %2216 = vst [vmem:[%s2906_s17 + $0x360] sm:$0xff] %v1091_v23  ;;  %v4863_v28 = vrot.slane %v4222_v0, 4  ;;  %v4865_v34 = vrot.slane %v4246_v20, 4  ;;  %v4867_v20 = vrot.slane %v4268_v52, 4 }
 0x113   : > { %v1003_v43 = vsel %vm316_vm0, %v4206_v47, %v4862_v24  ;;  %v4512_v11 = vperm.slane %v991_v59, %v2722_v7  ;;  %v4864_v47 = vrot.slane %v4225_v58, 4  ;;  %v2097_v1 = vsel %vm316_vm0, %v2096_v15, %v2055_v50  ;;  %2217 = vst [vmem:[%s2906_s17 + $0x368] sm:$0xff] %v1987_v38  ;;  %v4877_v59 = vld [vmem:[#allocation10_spill] sm:$0xff] }
 0x114   : > { %v4516_v42 = vperm.slane %v1003_v43, %v2722_v7  ;;  %v1015_v48 = vsel %vm316_vm0, %v4214_v56, %v4863_v28  ;;  %v1887_v39 = vsel %vm316_vm0, %v4237_v27, %v4865_v34  ;;  %2215 = vst [vmem:[%s2906_s17 + $0x358] sm:$0xff] %v2097_v1  ;;  %v1911_v36 = vsel %vm316_vm0, %v4271_v21, %v4867_v20  ;;  %v4878_v28 = vld [vmem:[#allocation11_spill] sm:$0xff] }
 0x115   : > { %v1027_v45 = vsel %vm316_vm0, %v4228_v9, %v4864_v47  ;;  %v4533_v33 = vperm.slane %v1015_v48, %v2722_v7  ;;  %v4539_v56 = vperm.slane %v1887_v39, %v2722_v7  ;;  %v4866_v9 = vrot.slane %v4258_v26, 4  ;;  %2218 = vst [vmem:[%s2906_s17 + $0x370] sm:$0xff] %v1203_v4  ;;  %v4880_v47 = vld [vmem:[#allocation12_spill] sm:$0xff] }
 0x116   : > { %v4536_v0 = vperm.slane %v1027_v45, %v2722_v7  ;;  %v1048_v58 = vrot.slane %v4516_v42, 4  ;;  %v4868_v2 = vrot.slane %v4291_v44, 4  ;;  %v4561_v26 = vperm.slane %v1911_v36, %v2722_v7  ;;  %2219 = vst [vmem:[%s2906_s17 + $0x378] sm:$0xff] %v2099_v57 }
 0x117   : > { %v1899_v27 = vsel %vm316_vm0, %v4249_v51, %v4866_v9  ;;  %v4869_v21 = vrot.slane %v4314_v62, 4  ;;  %v4870_v44 = vrot.slane %v4323_v8, 4  ;;  %v4871_v30 = vrot.slane %v4347_v55, 4 }
 0x118   : > { %v1923_v5 = vsel %vm316_vm0, %v4281_v18, %v4868_v2  ;;  %v1072_v16 = vrot.slane %v4536_v0, 4  ;;  %v4558_v13 = vperm.slane %v1899_v27, %v2722_v7  ;;  %v1049_v52 = vsel %vm316_vm0, %v1048_v58, %v4512_v11 }
 0x119   : > { %v4564_v51 = vperm.slane %v1923_v5, %v2722_v7  ;;  %v1103_v18 = vsel %vm316_vm0, %v4297_v61, %v4869_v21  ;;  %v1115_v29 = vsel %vm316_vm0, %v4326_v60, %v4870_v44  ;;  %v1127_v54 = vsel %vm316_vm0, %v4338_v40, %v4871_v30 }
 0x11a   : > { %v1055_v12 = vperm.slane %v1049_v52, %v2745_v19  ;;  %v1073_v50 = vsel %vm316_vm0, %v1072_v16, %v4533_v33  ;;  %v1944_v62 = vrot.slane %v4558_v13, 4  ;;  %v4588_v8 = vperm.slane %v1103_v18, %v2722_v7 }
 0x11b   : > { %v1968_v32 = vrot.slane %v4564_v51, 4  ;;  %v1079_v61 = vperm.slane %v1073_v50, %v2745_v19  ;;  %v4591_v60 = vperm.slane %v1115_v29, %v2722_v7  ;;  %v4594_v55 = vperm.slane %v1127_v54, %v2722_v7 }
 0x11c   : > { %v1945_v40 = vsel %vm316_vm0, %v1944_v62, %v4539_v56  ;;  %v4872_v25 = vrot.slane %v4350_v53, 4  ;;  %v4873_v49 = vrot.slane %v4378_v6, 4  ;;  %v4879_v48 = vrot.slane %v4878_v28, 4 }
 0x11d   : > { %v1969_v37 = vsel %vm316_vm0, %v1968_v32, %v4561_v26  ;;  %v1092_v23 = vrot.slane %v1079_v61, 4  ;;  %v1951_v17 = vperm.slane %v1945_v40, %v2745_v19  ;;  %v1160_v38 = vrot.slane %v4591_v60, 4 }
 0x11e   : > { %v1139_v10 = vsel %vm316_vm0, %v4353_v35, %v4872_v25  ;;  %v1999_v14 = vsel %vm316_vm0, %v4370_v41, %v4873_v49  ;;  %v1975_v63 = vperm.slane %v1969_v37, %v2745_v19  ;;  %v4874_v35 = vrot.slane %v4393_v46, 4  ;;  %v4875_v41 = vld [vmem:[#allocation9_spill] sm:$0xff] }
 0x11f   : > { %v4611_v22 = vperm.slane %v1139_v10, %v2722_v7  ;;  %v4615_v53 = vperm.slane %v1999_v14, %v2722_v7  ;;  %v4876_v3 = vrot.slane %v4875_v41, 4  ;;  %v1093_v43 = vsel %vm316_vm0, %v1092_v23, %v1055_v12 }
 0x120   : > { %v2011_v6 = vsel %vm316_vm0, %v4381_v31, %v4874_v35  ;;  %v1988_v15 = vrot.slane %v1975_v63, 4  ;;  %2220 = vst [vmem:[%s2906_s17 + $0x380] sm:$0xff] %v1093_v43  ;;  %v1161_v46 = vsel %vm316_vm0, %v1160_v38, %v4588_v8  ;;  %v2035_v45 = vsel %vm316_vm0, %v4880_v47, %v4879_v48 }
 0x121   : > { %v2023_v24 = vsel %vm316_vm0, %v4877_v59, %v4876_v3  ;;  %v1184_v4 = vrot.slane %v4611_v22, 4  ;;  %v2019_v57 = vperm.slane %v2011_v6, %v2722_v7  ;;  %v1094_v34 = vrot.slane %v1055_v12, 4 }
 0x122   : > { %v4632_v31 = vperm.slane %v2023_v24, %v2722_v7  ;;  %v1989_v39 = vsel %vm316_vm0, %v1988_v15, %v1951_v17  ;;  %v1167_v1 = vperm.slane %v1161_v46, %v2745_v19  ;;  %v4643_v9 = vperm.slane %v2035_v45, %v2722_v7 }
 0x123   : > { %v1185_v58 = vsel %vm316_vm0, %v1184_v4, %v4594_v55  ;;  %2221 = vst [vmem:[%s2906_s17 + $0x388] sm:$0xff] %v1989_v39  ;;  %v2056_v20 = vrot.slane %v2019_v57, 4  ;;  %v1095_v36 = vsel %vm316_vm0, %v1079_v61, %v1094_v34  ;;  %v1990_v2 = vrot.slane %v1951_v17, 4 }
 0x124   : > { %v1191_v27 = vperm.slane %v1185_v58, %v2745_v19  ;;  %v2080_v5 = vrot.slane %v4643_v9, 4  ;;  %2224 = vst [vmem:[%s2906_s17 + $0x3a0] sm:$0xff] %v1095_v36  ;;  %v1206_v16 = vrot.slane %v1167_v1, 4  ;;  %v1050_v52 = vrot.slane %v4512_v11, 4 }
 0x125   : > { %v1074_v21 = vrot.slane %v4533_v33, 4  ;;  %v2057_v18 = vsel %vm316_vm0, %v2056_v20, %v4615_v53  ;;  %v1991_v44 = vsel %vm316_vm0, %v1975_v63, %v1990_v2  ;;  %v1946_v29 = vrot.slane %v4539_v56, 4 }
 0x126   : > { %v1204_v7 = vrot.slane %v1191_v27, 4  ;;  %v2063_v30 = vperm.slane %v2057_v18, %v2745_v19  ;;  %v2081_v54 = vsel %vm316_vm0, %v2080_v5, %v4632_v31  ;;  %2225 = vst [vmem:[%s2906_s17 + $0x3a8] sm:$0xff] %v1991_v44  ;;  %v1207_v11 = vsel %vm316_vm0, %v1191_v27, %v1206_v16 }
 0x127   : > { %v1051_v33 = vsel %vm316_vm0, %v4516_v42, %v1050_v52  ;;  %v2087_v50 = vperm.slane %v2081_v54, %v2745_v19  ;;  %2226 = vst [vmem:[%s2906_s17 + $0x3b0] sm:$0xff] %v1207_v11  ;;  %v1075_v56 = vsel %vm316_vm0, %v4536_v0, %v1074_v21  ;;  %v1947_v42 = vsel %vm316_vm0, %v4558_v13, %v1946_v29 }
 0x128   : > { %v1205_v12 = vsel %vm316_vm0, %v1204_v7, %v1167_v1  ;;  %v1059_v62 = vperm.slane %v1051_v33, %v2745_v19  ;;  %v2102_v32 = vrot.slane %v2063_v30, 4  ;;  %v1083_v61 = vperm.slane %v1075_v56, %v2745_v19 }
 0x129   : > { %2222 = vst [vmem:[%s2906_s17 + $0x390] sm:$0xff] %v1205_v12  ;;  %v1970_v40 = vrot.slane %v4561_v26, 4  ;;  %v2100_v37 = vrot.slane %v2087_v50, 4  ;;  %v1955_v25 = vperm.slane %v1947_v42, %v2745_v19  ;;  %v1162_v10 = vrot.slane %v4588_v8, 4 }
 0x12a   : > { %v1186_v0 = vrot.slane %v4594_v55, 4  ;;  %v2103_v49 = vsel %vm316_vm0, %v2087_v50, %v2102_v32  ;;  %v1096_v14 = vrot.slane %v1083_v61, 4  ;;  %v2058_v17 = vrot.slane %v4615_v53, 4 }
 0x12b   : > { %v1971_v23 = vsel %vm316_vm0, %v4564_v51, %v1970_v40  ;;  %v2101_v13 = vsel %vm316_vm0, %v2100_v37, %v2063_v30  ;;  %2227 = vst [vmem:[%s2906_s17 + $0x3b8] sm:$0xff] %v2103_v49  ;;  %v1163_v8 = vsel %vm316_vm0, %v4591_v60, %v1162_v10  ;;  %v2082_v60 = vrot.slane %v4632_v31, 4 }
 0x12c   : > { %v1979_v26 = vperm.slane %v1971_v23, %v2745_v19  ;;  %v1187_v55 = vsel %vm316_vm0, %v4611_v22, %v1186_v0  ;;  %2223 = vst [vmem:[%s2906_s17 + $0x398] sm:$0xff] %v2101_v13  ;;  %v1097_v63 = vsel %vm316_vm0, %v1096_v14, %v1059_v62  ;;  %v1171_v38 = vperm.slane %v1163_v8, %v2745_v19 }
 0x12d   : > { %v1195_v51 = vperm.slane %v1187_v55, %v2745_v19  ;;  %v2059_v53 = vsel %vm316_vm0, %v2019_v57, %v2058_v17  ;;  %2228 = vst [vmem:[%s2906_s17 + $0x3c0] sm:$0xff] %v1097_v63  ;;  %v1098_v41 = vrot.slane %v1059_v62, 4  ;;  %v1994_v3 = vrot.slane %v1955_v25, 4 }
 0x12e   : > { %v1992_v35 = vrot.slane %v1979_v26, 4  ;;  %v2067_v6 = vperm.slane %v2059_v53, %v2745_v19  ;;  %v1210_v59 = vrot.slane %v1171_v38, 4  ;;  %v2083_v43 = vsel %vm316_vm0, %v4643_v9, %v2082_v60 }
 0x12f   : > { %v1208_v22 = vrot.slane %v1195_v51, 4  ;;  %v1099_v15 = vsel %vm316_vm0, %v1083_v61, %v1098_v41  ;;  %v2091_v46 = vperm.slane %v2083_v43, %v2745_v19  ;;  %v1995_v31 = vsel %vm316_vm0, %v1979_v26, %v1994_v3 }
 0x130   : > { %v1993_v24 = vsel %vm316_vm0, %v1992_v35, %v1955_v25  ;;  %v2106_v4 = vrot.slane %v2067_v6, 4  ;;  %v1211_v28 = vsel %vm316_vm0, %v1195_v51, %v1210_v59  ;;  %2232 = vst [vmem:[%s2906_s17 + $0x3e0] sm:$0xff] %v1099_v15 }
 0x131   : > { %2229 = vst [vmem:[%s2906_s17 + $0x3c8] sm:$0xff] %v1993_v24  ;;  %v1209_v57 = vsel %vm316_vm0, %v1208_v22, %v1171_v38  ;;  %v2104_v48 = vrot.slane %v2091_v46, 4 }
 0x132   : > { %2230 = vst [vmem:[%s2906_s17 + $0x3d0] sm:$0xff] %v1209_v57  ;;  %v2107_v47 = vsel %vm316_vm0, %v2091_v46, %v2106_v4 }
 0x133   : > { %2233 = vst [vmem:[%s2906_s17 + $0x3e8] sm:$0xff] %v1995_v31  ;;  %v2105_v45 = vsel %vm316_vm0, %v2104_v48, %v2067_v6 }
 0x134   : > { %2234 = vst [vmem:[%s2906_s17 + $0x3f0] sm:$0xff] %v1211_v28 }
 0x135   : > { %2231 = vst [vmem:[%s2906_s17 + $0x3d8] sm:$0xff] %v2105_v45 }
 0x136   : > { %2235 = vst [vmem:[%s2906_s17 + $0x3f8] sm:$0xff] %v2107_v47 }
 0x137   : > { %2522 = shalt.err (!%p2519_p11)
}
 0x138   : > { %s2599_s20 = smov 256   ;;  %s2600_s17 = smov 16  }
 0x139   : > { %2383 = dma.vmem_to_hbm [thread:$0]  (%p2676_p9), %s2258_s5, 16384, %s2260_s14, %s2237_s15, %s2599_s20, %s2599_s20, %s2600_s17  }
 0x13a PF: > { %p2394_p13 = scmp.ge.s32.totalorder %s2593_s13, 2  ;;  %s2274_s21 = sand.u32 1, %s2565_s6  }
 0x13b   : > { %s2275_s26 = scalar_lea.sflag [#allocation4], %s2274_s21 }
 0x13c   : > { %p2390_p0 = pnand %p2394_p13, %p2682_p12 }
 0x13e   : > { %p2391_p1 = pneg %p2390_p0 }
 0x140   : > { %2560 = dma.done.wait (%p2391_p1), %s2275_s26, 16384  }
 0x141   : > { %2562 = vsyncadd (%p2391_p1), %s2275_s26, 4294950912  ;;  %s17_s13 = sadd.s32 1, %s2593_s13   ;;  %s4881_s22 = sld [smem:[#allocation8_spill]] }
 0x142   : > { %p14_p2 = scmp.ge.s32.totalorder %s17_s13, 8   ;;  %s4882_s6 = smov %s2569_s7 }
 0x143   : > { %s4883_s7 = smov %s2573_s8  ;;  %s4884_s8 = smov %s2689_s27 }
 0x144   : > { %s4885_s9 = smov %s2585_s11  ;;  %s4886_s10 = smov %s2589_s12 }
 0x145   : > { %s4887_s11 = smov %s4890_s16  ;;  %16 = sbr.rel (!%p14_p2) target bundleno = 7 (0x7), region = 69 }
 0x147   : > { %s4888_s12 = smov %s4881_s22 }
 0x14a   :  { %2281 = vsyncpa [#allocation3], 1 }
 0x14b   :  { %2283 = vsyncpa [#allocation3 + $0x1], 1 }
 0x14c   :  { %2284 = vsyncpa [#allocation4], 1 }
 0x14d   :  { %2286 = vsyncpa [#allocation4 + $0x1], 1 }

</bundles_post_ra>
